<compile_context>
chip_gen: v7x
topology: tpu7x:2x2x1
jax: 0.10.0
libtpu: 0.0.40
codegen_flags: <defaults>
</compile_context>

<pallas_src>
import jax
import jax.numpy as jnp
from jax.experimental import pallas as pl
from jax.experimental.pallas import tpu as pltpu


def _round_up(n, m):
    return ((n + m - 1) // m) * m


def _vmem_capacity_bytes():
    """Generation-aware VMEM capacity (v5e/v6e: 128 MiB, v7x: 64 MiB/TC)."""
    try:
        cap = getattr(pltpu.get_tpu_info(), "vmem_capacity_bytes", None)
        if cap:
            return int(cap)
    except Exception:
        pass
    return 64 * 1024 * 1024  # conservative default (v7x per-TC)


def _pick_seq_tile(S, Bp, Hp, nd, x_bytes, y_bytes, budget_bytes, max_unroll=64):
    """Largest seq tile whose double-buffered in/out streams fit the VMEM budget.

    Capped at `max_unroll` because the in-kernel time loop is fully unrolled
    (static indices).  S is padded up to a multiple of the tile, so there is
    no divisor-of-S / prime-S perf cliff.
    """
    per_t = 2 * nd * Bp * Hp * (x_bytes + y_bytes)          # double-buffered streams
    fixed = 2 * nd * Hp * Hp * x_bytes + (nd + 2) * Bp * Hp * 4
    avail = max(budget_bytes - fixed, per_t)
    return max(1, min(int(avail // per_t), S, max_unroll))


def _make_recurrence_kernel(nd, mxu_dtype):
    """Recurrence kernel with `nd` interleaved direction chains.

    refs = (xproj_0..xproj_{nd-1}, whhT_0..whhT_{nd-1}, h0,
            y_0..y_{nd-1}, h_scratch_0..h_scratch_{nd-1})
    Direction 0 walks each tile forward, direction 1 backward (its blocks were
    already reversed by the index_map), so every load/store uses a STATIC
    timestep index and outputs land at their original positions.
    """
    def kernel(*refs):
        x_refs = refs[:nd]
        w_refs = refs[nd:2 * nd]
        h0_ref = refs[2 * nd]
        y_refs = refs[2 * nd + 1:3 * nd + 1]
        h_scs = refs[3 * nd + 1:4 * nd + 1]

        @pl.when(pl.program_id(0) == 0)
        def _():
            h0 = h0_ref[...].astype(jnp.float32)
            for d in range(nd):
                h_scs[d][...] = h0

        ts = x_refs[0].shape[0]
        ws = [w_refs[d][...] for d in range(nd)]
        hs = [h_scs[d][...] for d in range(nd)]

        # Fully unrolled; the nd independent dependency chains interleave so
        # the MXU work of one direction hides the EUP tanh of the other
        # (single-TensorCore v5e/v6e get ~2x on the recurrence).
        for i in range(ts):
            idx = (i, ts - 1 - i)
            new_hs = []
            for d in range(nd):
                pre = x_refs[d][idx[d]].astype(jnp.float32) + jnp.dot(
                    hs[d].astype(mxu_dtype), ws[d],
                    preferred_element_type=jnp.float32)
                new_hs.append(jnp.tanh(pre))
            for d in range(nd):
                y_refs[d][idx[d]] = new_hs[d].astype(y_refs[d].dtype)
            hs = new_hs

        for d in range(nd):
            h_scs[d][...] = hs[d]

    return kernel


def _run_recurrence(xprojs, w_hh_ts, h0, seq_tile, out_dtype, mxu_dtype):
    """xprojs/w_hh_ts: per-direction lists; returns list of (Sp, Bp, Hp) outputs."""
    nd = len(xprojs)
    Sp, Bp, Hp = xprojs[0].shape
    n_blocks = Sp // seq_tile

    fwd_map = lambda s: (s, 0, 0)
    bwd_map = lambda s: (n_blocks - 1 - s, 0, 0)   # bwd consumes blocks in reverse
    dir_maps = (fwd_map, bwd_map)

    in_specs = (
        [pl.BlockSpec((seq_tile, Bp, Hp), dir_maps[d]) for d in range(nd)]
        + [pl.BlockSpec((Hp, Hp), lambda s: (0, 0)) for _ in range(nd)]
        + [pl.BlockSpec((Bp, Hp), lambda s: (0, 0))]
    )
    out_specs = [pl.BlockSpec((seq_tile, Bp, Hp), dir_maps[d]) for d in range(nd)]
    out_shape = [jax.ShapeDtypeStruct((Sp, Bp, Hp), out_dtype) for _ in range(nd)]

    x_bytes = jnp.dtype(xprojs[0].dtype).itemsize
    y_bytes = jnp.dtype(out_dtype).itemsize
    est = (2 * nd * seq_tile * Bp * Hp * (x_bytes + y_bytes)
           + 2 * nd * Hp * Hp * x_bytes + (nd + 2) * Bp * Hp * 4)
    vmem_cap = _vmem_capacity_bytes()
    vmem_limit = int(min(0.85 * vmem_cap, max(64 * 1024 * 1024, 2 * est)))

    grid_spec = pltpu.PrefetchScalarGridSpec(
        num_scalar_prefetch=0,
        grid=(n_blocks,),
        in_specs=in_specs,
        out_specs=out_specs,
        scratch_shapes=[pltpu.VMEM((Bp, Hp), jnp.float32) for _ in range(nd)],
    )

    # TODO(synk): on v7x (2 TensorCores) a "parallel" batch-block axis (or a
    # per-direction parallel axis for long sequences) could engage the second
    # core; kept single-core-optimal (interleaved chains) here.
    return pl.pallas_call(
        _make_recurrence_kernel(nd, mxu_dtype),
        out_shape=out_shape,
        grid_spec=grid_spec,
        compiler_params=pltpu.CompilerParams(
            dimension_semantics=("arbitrary",),   # serial recurrence over seq
            vmem_limit_bytes=vmem_limit,
        ),
    )(*xprojs, *w_hh_ts, h0)


def init_custom_rnn_params(key, input_dim, hidden_size, bidirectional=False):
    """Deterministic init mimicking nn.Linear default (uniform +-1/sqrt(fan_in))."""
    def linear(k, fan_in, fan_out):
        k1, k2 = jax.random.split(k)
        bound = 1.0 / jnp.sqrt(fan_in)
        w = jax.random.uniform(k1, (fan_out, fan_in), jnp.float32, -bound, bound)
        b = jax.random.uniform(k2, (fan_out,), jnp.float32, -bound, bound)
        return w, b

    keys = jax.random.split(key, 4)
    w_ih_f, b_ih_f = linear(keys[0], input_dim, hidden_size)
    w_hh_f, b_hh_f = linear(keys[1], hidden_size, hidden_size)
    params = {"fwd": {"w_ih": w_ih_f, "b_ih": b_ih_f, "w_hh": w_hh_f, "b_hh": b_hh_f}}
    if bidirectional:
        w_ih_b, b_ih_b = linear(keys[2], input_dim, hidden_size)
        w_hh_b, b_hh_b = linear(keys[3], hidden_size, hidden_size)
        params["bwd"] = {"w_ih": w_ih_b, "b_ih": b_ih_b, "w_hh": w_hh_b, "b_hh": b_hh_b}
    return params


def custom_rnn_forward(params, x, h0=None, bidirectional=False,
                       mxu_dtype=jnp.bfloat16, max_seq_tile=None):
    """x: (batch, seq, input_dim) -> (batch, seq, H) or (batch, seq, 2*H).

    As in the PyTorch module, both directions start from the SAME h0 (default
    zeros).  Recurrent state is f32; MXU operands use `mxu_dtype`
    (bf16 default, pass jnp.float32 for bit-tight f32 behavior).
    """
    B, S, _ = x.shape
    H = params["fwd"]["w_ih"].shape[0]
    dirs = ["fwd"] + (["bwd"] if bidirectional else [])
    nd = len(dirs)

    if h0 is None:
        h0 = jnp.zeros((B, H), x.dtype)

    # Lane/sublane alignment: H -> multiple of 128 (lanes), B -> multiple of 8.
    Bp = _round_up(B, 8)
    Hp = _round_up(H, 128)

    x_bytes = jnp.dtype(mxu_dtype).itemsize
    y_bytes = jnp.dtype(x.dtype).itemsize
    budget = int(0.6 * _vmem_capacity_bytes())
    seq_tile = _pick_seq_tile(S, Bp, Hp, nd, x_bytes, y_bytes, budget)
    if max_seq_tile is not None:
        seq_tile = max(1, min(seq_tile, int(max_seq_tile)))
    n_blocks = -(-S // seq_tile)
    Sp = n_blocks * seq_tile
    pad_s = Sp - S

    w_ih = jnp.stack([params[d]["w_ih"] for d in dirs])                      # (nd, H, D)
    bias = jnp.stack([params[d]["b_ih"] + params[d]["b_hh"] for d in dirs])  # (nd, H)
    w_hh_t = jnp.stack([params[d]["w_hh"].T for d in dirs])                  # (nd, H, H)

    w_ih = jnp.pad(w_ih, ((0, 0), (0, Hp - H), (0, 0)))
    bias = jnp.pad(bias, ((0, 0), (0, Hp - H)))
    w_hh_t = jnp.pad(w_hh_t, ((0, 0), (0, Hp - H), (0, Hp - H))).astype(mxu_dtype)
    x_p = jnp.pad(x, ((0, Bp - B), (0, 0), (0, 0)))
    h0_p = jnp.pad(h0, ((0, Bp - B), (0, Hp - H))).astype(jnp.float32)

    # Hoisted time-invariant input projection: one big MXU matmul with biases
    # folded, emitted time-major so the recurrence kernel's tiles are
    # lane-dense.  bf16 xproj also halves the HBM stream feeding the kernel.
    xproj = (jnp.einsum("bsd,nhd->nsbh",
                        x_p.astype(mxu_dtype), w_ih.astype(mxu_dtype),
                        preferred_element_type=jnp.float32)
             + bias[:, None, None, :]).astype(mxu_dtype)                     # (nd, S, Bp, Hp)

    # Direction-specific sequence padding to a multiple of seq_tile:
    # fwd padded at the END, bwd padded at the FRONT, so padded (garbage)
    # steps are always processed AFTER every real step of their chain and
    # never contaminate real outputs.
    xprojs = [jnp.pad(xproj[0], ((0, pad_s), (0, 0), (0, 0)))]
    if bidirectional:
        xprojs.append(jnp.pad(xproj[1], ((pad_s, 0), (0, 0), (0, 0))))

    ys = _run_recurrence(xprojs, [w_hh_t[d] for d in range(nd)], h0_p,
                         seq_tile, x.dtype, mxu_dtype)

    yf = ys[0][:S, :B, :H]                                    # (S, B, H)
    if bidirectional:
        yb = ys[1][pad_s:pad_s + S, :B, :H]
        y = jnp.concatenate([yf, yb], axis=-1)                # (S, B, 2H)
    else:
        y = yf
    # Single layout pass: time-major (kernel-friendly, lane-dense stores) ->
    # batch-major as the PyTorch module returns.
    return jnp.transpose(y, (1, 0, 2))


def _reference_forward(params, x, bidirectional):
    """Plain-JAX reference matching the PyTorch forward exactly (f32)."""
    B, S, _ = x.shape
    H = params["fwd"]["w_ih"].shape[0]

    def cell(c, xt, h):
        return jnp.tanh(xt @ c["w_ih"].T + c["b_ih"] + h @ c["w_hh"].T + c["b_hh"])

    h = jnp.zeros((B, H), x.dtype)
    fwd = []
    for t in range(S):
        h = cell(params["fwd"], x[:, t, :], h)
        fwd.append(h[:, None, :])
    fwd = jnp.concatenate(fwd, axis=1)
    if not bidirectional:
        return fwd
    h = jnp.zeros((B, H), x.dtype)
    bwd = []
    for t in reversed(range(S)):
        h = cell(params["bwd"], x[:, t, :], h)
        bwd.insert(0, h[:, None, :])
    bwd = jnp.concatenate(bwd, axis=1)
    return jnp.concatenate([fwd, bwd], axis=2)


if __name__ == "__main__":
    batch, seq, input_dim, hidden = 2, 8, 16, 32
    bidirectional = True

    key = jax.random.PRNGKey(0)
    k_param, k_x = jax.random.split(key)
    params = init_custom_rnn_params(k_param, input_dim, hidden, bidirectional)
    x = jax.random.normal(k_x, (batch, seq, input_dim), jnp.float32)

    ref = _reference_forward(params, x, bidirectional)

    # 1) f32 MXU path: tight check against the PyTorch-equivalent reference.
    out = jax.block_until_ready(
        custom_rnn_forward(params, x, bidirectional=True, mxu_dtype=jnp.float32))
    assert out.shape == (batch, seq, 2 * hidden), out.shape
    err = float(jnp.max(jnp.abs(out - ref)))
    assert jnp.allclose(out, ref, atol=2e-5, rtol=2e-5), err

    # 2) Default perf config (bf16 MXU operands, f32 accumulation): loose check.
    out_bf = jax.block_until_ready(custom_rnn_forward(params, x, bidirectional=True))
    assert out_bf.shape == (batch, seq, 2 * hidden)
    assert bool(jnp.all(jnp.isfinite(out_bf)))
    assert float(jnp.max(jnp.abs(out_bf - ref))) < 0.25

    # 3) Unidirectional path.
    out1 = jax.block_until_ready(
        custom_rnn_forward(params, x, bidirectional=False, mxu_dtype=jnp.float32))
    ref1 = _reference_forward(params, x, False)
    assert out1.shape == (batch, seq, hidden)
    assert jnp.allclose(out1, ref1, atol=2e-5, rtol=2e-5)

    # 4) Non-divisible sequence length: exercises the padded remainder tile and
    #    multi-block state carry (seq_tile forced small for the test).
    seq2 = 10
    x2 = jax.random.normal(jax.random.PRNGKey(1), (batch, seq2, input_dim), jnp.float32)
    out2 = jax.block_until_ready(
        custom_rnn_forward(params, x2, bidirectional=True,
                           mxu_dtype=jnp.float32, max_seq_tile=4))
    ref2 = _reference_forward(params, x2, True)
    assert out2.shape == (batch, seq2, 2 * hidden)
    assert jnp.allclose(out2, ref2, atol=2e-5, rtol=2e-5)

    print("KERNEL_OK")
</pallas_src>

<mosaic_0001>
module attributes {stable_mosaic.version = 11 : i64} {
  func.func @kernel(%arg0: i32, %arg1: memref<8x8x128xf32, #tpu.memory_space<vmem>>, %arg2: memref<8x8x128xf32, #tpu.memory_space<vmem>>, %arg3: memref<128x128xf32, #tpu.memory_space<vmem>>, %arg4: memref<128x128xf32, #tpu.memory_space<vmem>>, %arg5: memref<8x128xf32, #tpu.memory_space<vmem>>, %arg6: memref<8x8x128xf32, #tpu.memory_space<vmem>>, %arg7: memref<8x8x128xf32, #tpu.memory_space<vmem>>, %arg8: memref<8x128xf32, #tpu.memory_space<vmem>>, %arg9: memref<8x128xf32, #tpu.memory_space<vmem>>) attributes {dimension_semantics = [#tpu.dimension_semantics<arbitrary>], iteration_bounds = array<i64: 1>, scalar_prefetch = 0 : i64, scratch_operands = 2 : i64, tpu.core_type = #tpu.core_type<tc>, window_params = [{transform_indices = @transform_0, window_bounds = array<i64: 8, 8, 128>}, {transform_indices = @transform_1, window_bounds = array<i64: 8, 8, 128>}, {pipeline_mode = #tpu.pipeline_mode<synchronous>, transform_indices = @transform_2, window_bounds = array<i64: 128, 128>}, {pipeline_mode = #tpu.pipeline_mode<synchronous>, transform_indices = @transform_3, window_bounds = array<i64: 128, 128>}, {pipeline_mode = #tpu.pipeline_mode<synchronous>, transform_indices = @transform_4, window_bounds = array<i64: 8, 128>}, {transform_indices = @transform_5, window_bounds = array<i64: 8, 8, 128>}, {transform_indices = @transform_6, window_bounds = array<i64: 8, 8, 128>}]} {
    %c0_i32 = arith.constant 0 : i32
    %0 = arith.cmpi eq, %arg0, %c0_i32 : i32
    %1 = arith.extui %0 : i1 to i32
    %c0_i32_0 = arith.constant 0 : i32
    %2 = arith.cmpi ne, %1, %c0_i32_0 : i32
    scf.if %2 {
      %c0_116 = arith.constant 0 : index
      %c0_117 = arith.constant 0 : index
      %137 = vector.load %arg5[%c0_116, %c0_117] : memref<8x128xf32, #tpu.memory_space<vmem>>, vector<8x128xf32>
      %c0_118 = arith.constant 0 : index
      %c0_119 = arith.constant 0 : index
      %138 = vector.load %arg8[%c0_118, %c0_119] : memref<8x128xf32, #tpu.memory_space<vmem>>, vector<8x128xf32>
      tpu.vector_store %arg8[%c0_118, %c0_119], %137 {strides = array<i32>} : memref<8x128xf32, #tpu.memory_space<vmem>>, vector<8x128xf32>,
      %c0_120 = arith.constant 0 : index
      %c0_121 = arith.constant 0 : index
      %139 = vector.load %arg9[%c0_120, %c0_121] : memref<8x128xf32, #tpu.memory_space<vmem>>, vector<8x128xf32>
      tpu.vector_store %arg9[%c0_120, %c0_121], %137 {strides = array<i32>} : memref<8x128xf32, #tpu.memory_space<vmem>>, vector<8x128xf32>,
    } else {
    }
    %c0 = arith.constant 0 : index
    %c0_1 = arith.constant 0 : index
    %3 = vector.load %arg3[%c0, %c0_1] : memref<128x128xf32, #tpu.memory_space<vmem>>, vector<128x128xf32>
    %c0_2 = arith.constant 0 : index
    %c0_3 = arith.constant 0 : index
    %4 = vector.load %arg4[%c0_2, %c0_3] : memref<128x128xf32, #tpu.memory_space<vmem>>, vector<128x128xf32>
    %c0_4 = arith.constant 0 : index
    %c0_5 = arith.constant 0 : index
    %5 = vector.load %arg8[%c0_4, %c0_5] : memref<8x128xf32, #tpu.memory_space<vmem>>, vector<8x128xf32>
    %c0_6 = arith.constant 0 : index
    %c0_7 = arith.constant 0 : index
    %6 = vector.load %arg9[%c0_6, %c0_7] : memref<8x128xf32, #tpu.memory_space<vmem>>, vector<8x128xf32>
    %c0_8 = arith.constant 0 : index
    %c0_9 = arith.constant 0 : index
    %c0_10 = arith.constant 0 : index
    %7 = vector.load %arg1[%c0_8, %c0_9, %c0_10] : memref<8x8x128xf32, #tpu.memory_space<vmem>>, vector<1x8x128xf32>
    %8 = vector.shape_cast %7 : vector<1x8x128xf32> to vector<8x128xf32>
    %cst = arith.constant dense<0.000000e+00> : vector<8x128xf32>
    %9 = tpu.matmul %5, %3, %cst {dimension_numbers = #tpu.dot_dimension_numbers<[1], [0], [0], [1], [0, 0, 1, 1], [], []>} : vector<8x128xf32>, vector<128x128xf32>, vector<8x128xf32> -> vector<8x128xf32>
    %10 = arith.addf %8, %9 : vector<8x128xf32>
    %11 = math.tanh %10 : vector<8x128xf32>
    %c7 = arith.constant 7 : index
    %c0_11 = arith.constant 0 : index
    %c0_12 = arith.constant 0 : index
    %12 = vector.load %arg2[%c7, %c0_11, %c0_12] : memref<8x8x128xf32, #tpu.memory_space<vmem>>, vector<1x8x128xf32>
    %13 = vector.shape_cast %12 : vector<1x8x128xf32> to vector<8x128xf32>
    %cst_13 = arith.constant dense<0.000000e+00> : vector<8x128xf32>
    %14 = tpu.matmul %6, %4, %cst_13 {dimension_numbers = #tpu.dot_dimension_numbers<[1], [0], [0], [1], [0, 0, 1, 1], [], []>} : vector<8x128xf32>, vector<128x128xf32>, vector<8x128xf32> -> vector<8x128xf32>
    %15 = arith.addf %13, %14 : vector<8x128xf32>
    %16 = math.tanh %15 : vector<8x128xf32>
    %c0_14 = arith.constant 0 : index
    %c0_15 = arith.constant 0 : index
    %c0_16 = arith.constant 0 : index
    %17 = vector.load %arg6[%c0_14, %c0_15, %c0_16] : memref<8x8x128xf32, #tpu.memory_space<vmem>>, vector<1x8x128xf32>
    %18 = vector.shape_cast %17 : vector<1x8x128xf32> to vector<8x128xf32>
    %19 = vector.shape_cast %11 : vector<8x128xf32> to vector<1x8x128xf32>
    tpu.vector_store %arg6[%c0_14, %c0_15, %c0_16], %19 {strides = array<i32>} : memref<8x8x128xf32, #tpu.memory_space<vmem>>, vector<1x8x128xf32>,
    %c7_17 = arith.constant 7 : index
    %c0_18 = arith.constant 0 : index
    %c0_19 = arith.constant 0 : index
    %20 = vector.load %arg7[%c7_17, %c0_18, %c0_19] : memref<8x8x128xf32, #tpu.memory_space<vmem>>, vector<1x8x128xf32>
    %21 = vector.shape_cast %20 : vector<1x8x128xf32> to vector<8x128xf32>
    %22 = vector.shape_cast %16 : vector<8x128xf32> to vector<1x8x128xf32>
    tpu.vector_store %arg7[%c7_17, %c0_18, %c0_19], %22 {strides = array<i32>} : memref<8x8x128xf32, #tpu.memory_space<vmem>>, vector<1x8x128xf32>,
    %c1 = arith.constant 1 : index
    %c0_20 = arith.constant 0 : index
    %c0_21 = arith.constant 0 : index
    %23 = vector.load %arg1[%c1, %c0_20, %c0_21] : memref<8x8x128xf32, #tpu.memory_space<vmem>>, vector<1x8x128xf32>
    %24 = vector.shape_cast %23 : vector<1x8x128xf32> to vector<8x128xf32>
    %cst_22 = arith.constant dense<0.000000e+00> : vector<8x128xf32>
    %25 = tpu.matmul %11, %3, %cst_22 {dimension_numbers = #tpu.dot_dimension_numbers<[1], [0], [0], [1], [0, 0, 1, 1], [], []>} : vector<8x128xf32>, vector<128x128xf32>, vector<8x128xf32> -> vector<8x128xf32>
    %26 = arith.addf %24, %25 : vector<8x128xf32>
    %27 = math.tanh %26 : vector<8x128xf32>
    %c6 = arith.constant 6 : index
    %c0_23 = arith.constant 0 : index
    %c0_24 = arith.constant 0 : index
    %28 = vector.load %arg2[%c6, %c0_23, %c0_24] : memref<8x8x128xf32, #tpu.memory_space<vmem>>, vector<1x8x128xf32>
    %29 = vector.shape_cast %28 : vector<1x8x128xf32> to vector<8x128xf32>
    %cst_25 = arith.constant dense<0.000000e+00> : vector<8x128xf32>
    %30 = tpu.matmul %16, %4, %cst_25 {dimension_numbers = #tpu.dot_dimension_numbers<[1], [0], [0], [1], [0, 0, 1, 1], [], []>} : vector<8x128xf32>, vector<128x128xf32>, vector<8x128xf32> -> vector<8x128xf32>
    %31 = arith.addf %29, %30 : vector<8x128xf32>
    %32 = math.tanh %31 : vector<8x128xf32>
    %c1_26 = arith.constant 1 : index
    %c0_27 = arith.constant 0 : index
    %c0_28 = arith.constant 0 : index
    %33 = vector.load %arg6[%c1_26, %c0_27, %c0_28] : memref<8x8x128xf32, #tpu.memory_space<vmem>>, vector<1x8x128xf32>
    %34 = vector.shape_cast %33 : vector<1x8x128xf32> to vector<8x128xf32>
    %35 = vector.shape_cast %27 : vector<8x128xf32> to vector<1x8x128xf32>
    tpu.vector_store %arg6[%c1_26, %c0_27, %c0_28], %35 {strides = array<i32>} : memref<8x8x128xf32, #tpu.memory_space<vmem>>, vector<1x8x128xf32>,
    %c6_29 = arith.constant 6 : index
    %c0_30 = arith.constant 0 : index
    %c0_31 = arith.constant 0 : index
    %36 = vector.load %arg7[%c6_29, %c0_30, %c0_31] : memref<8x8x128xf32, #tpu.memory_space<vmem>>, vector<1x8x128xf32>
    %37 = vector.shape_cast %36 : vector<1x8x128xf32> to vector<8x128xf32>
    %38 = vector.shape_cast %32 : vector<8x128xf32> to vector<1x8x128xf32>
    tpu.vector_store %arg7[%c6_29, %c0_30, %c0_31], %38 {strides = array<i32>} : memref<8x8x128xf32, #tpu.memory_space<vmem>>, vector<1x8x128xf32>,
    %c2 = arith.constant 2 : index
    %c0_32 = arith.constant 0 : index
    %c0_33 = arith.constant 0 : index
    %39 = vector.load %arg1[%c2, %c0_32, %c0_33] : memref<8x8x128xf32, #tpu.memory_space<vmem>>, vector<1x8x128xf32>
    %40 = vector.shape_cast %39 : vector<1x8x128xf32> to vector<8x128xf32>
    %cst_34 = arith.constant dense<0.000000e+00> : vector<8x128xf32>
    %41 = tpu.matmul %27, %3, %cst_34 {dimension_numbers = #tpu.dot_dimension_numbers<[1], [0], [0], [1], [0, 0, 1, 1], [], []>} : vector<8x128xf32>, vector<128x128xf32>, vector<8x128xf32> -> vector<8x128xf32>
    %42 = arith.addf %40, %41 : vector<8x128xf32>
    %43 = math.tanh %42 : vector<8x128xf32>
    %c5 = arith.constant 5 : index
    %c0_35 = arith.constant 0 : index
    %c0_36 = arith.constant 0 : index
    %44 = vector.load %arg2[%c5, %c0_35, %c0_36] : memref<8x8x128xf32, #tpu.memory_space<vmem>>, vector<1x8x128xf32>
    %45 = vector.shape_cast %44 : vector<1x8x128xf32> to vector<8x128xf32>
    %cst_37 = arith.constant dense<0.000000e+00> : vector<8x128xf32>
    %46 = tpu.matmul %32, %4, %cst_37 {dimension_numbers = #tpu.dot_dimension_numbers<[1], [0], [0], [1], [0, 0, 1, 1], [], []>} : vector<8x128xf32>, vector<128x128xf32>, vector<8x128xf32> -> vector<8x128xf32>
    %47 = arith.addf %45, %46 : vector<8x128xf32>
    %48 = math.tanh %47 : vector<8x128xf32>
    %c2_38 = arith.constant 2 : index
    %c0_39 = arith.constant 0 : index
    %c0_40 = arith.constant 0 : index
    %49 = vector.load %arg6[%c2_38, %c0_39, %c0_40] : memref<8x8x128xf32, #tpu.memory_space<vmem>>, vector<1x8x128xf32>
    %50 = vector.shape_cast %49 : vector<1x8x128xf32> to vector<8x128xf32>
    %51 = vector.shape_cast %43 : vector<8x128xf32> to vector<1x8x128xf32>
    tpu.vector_store %arg6[%c2_38, %c0_39, %c0_40], %51 {strides = array<i32>} : memref<8x8x128xf32, #tpu.memory_space<vmem>>, vector<1x8x128xf32>,
    %c5_41 = arith.constant 5 : index
    %c0_42 = arith.constant 0 : index
    %c0_43 = arith.constant 0 : index
    %52 = vector.load %arg7[%c5_41, %c0_42, %c0_43] : memref<8x8x128xf32, #tpu.memory_space<vmem>>, vector<1x8x128xf32>
    %53 = vector.shape_cast %52 : vector<1x8x128xf32> to vector<8x128xf32>
    %54 = vector.shape_cast %48 : vector<8x128xf32> to vector<1x8x128xf32>
    tpu.vector_store %arg7[%c5_41, %c0_42, %c0_43], %54 {strides = array<i32>} : memref<8x8x128xf32, #tpu.memory_space<vmem>>, vector<1x8x128xf32>,
    %c3 = arith.constant 3 : index
    %c0_44 = arith.constant 0 : index
    %c0_45 = arith.constant 0 : index
    %55 = vector.load %arg1[%c3, %c0_44, %c0_45] : memref<8x8x128xf32, #tpu.memory_space<vmem>>, vector<1x8x128xf32>
    %56 = vector.shape_cast %55 : vector<1x8x128xf32> to vector<8x128xf32>
    %cst_46 = arith.constant dense<0.000000e+00> : vector<8x128xf32>
    %57 = tpu.matmul %43, %3, %cst_46 {dimension_numbers = #tpu.dot_dimension_numbers<[1], [0], [0], [1], [0, 0, 1, 1], [], []>} : vector<8x128xf32>, vector<128x128xf32>, vector<8x128xf32> -> vector<8x128xf32>
    %58 = arith.addf %56, %57 : vector<8x128xf32>
    %59 = math.tanh %58 : vector<8x128xf32>
    %c4 = arith.constant 4 : index
    %c0_47 = arith.constant 0 : index
    %c0_48 = arith.constant 0 : index
    %60 = vector.load %arg2[%c4, %c0_47, %c0_48] : memref<8x8x128xf32, #tpu.memory_space<vmem>>, vector<1x8x128xf32>
    %61 = vector.shape_cast %60 : vector<1x8x128xf32> to vector<8x128xf32>
    %cst_49 = arith.constant dense<0.000000e+00> : vector<8x128xf32>
    %62 = tpu.matmul %48, %4, %cst_49 {dimension_numbers = #tpu.dot_dimension_numbers<[1], [0], [0], [1], [0, 0, 1, 1], [], []>} : vector<8x128xf32>, vector<128x128xf32>, vector<8x128xf32> -> vector<8x128xf32>
    %63 = arith.addf %61, %62 : vector<8x128xf32>
    %64 = math.tanh %63 : vector<8x128xf32>
    %c3_50 = arith.constant 3 : index
    %c0_51 = arith.constant 0 : index
    %c0_52 = arith.constant 0 : index
    %65 = vector.load %arg6[%c3_50, %c0_51, %c0_52] : memref<8x8x128xf32, #tpu.memory_space<vmem>>, vector<1x8x128xf32>
    %66 = vector.shape_cast %65 : vector<1x8x128xf32> to vector<8x128xf32>
    %67 = vector.shape_cast %59 : vector<8x128xf32> to vector<1x8x128xf32>
    tpu.vector_store %arg6[%c3_50, %c0_51, %c0_52], %67 {strides = array<i32>} : memref<8x8x128xf32, #tpu.memory_space<vmem>>, vector<1x8x128xf32>,
    %c4_53 = arith.constant 4 : index
    %c0_54 = arith.constant 0 : index
    %c0_55 = arith.constant 0 : index
    %68 = vector.load %arg7[%c4_53, %c0_54, %c0_55] : memref<8x8x128xf32, #tpu.memory_space<vmem>>, vector<1x8x128xf32>
    %69 = vector.shape_cast %68 : vector<1x8x128xf32> to vector<8x128xf32>
    %70 = vector.shape_cast %64 : vector<8x128xf32> to vector<1x8x128xf32>
    tpu.vector_store %arg7[%c4_53, %c0_54, %c0_55], %70 {strides = array<i32>} : memref<8x8x128xf32, #tpu.memory_space<vmem>>, vector<1x8x128xf32>,
    %c4_56 = arith.constant 4 : index
    %c0_57 = arith.constant 0 : index
    %c0_58 = arith.constant 0 : index
    %71 = vector.load %arg1[%c4_56, %c0_57, %c0_58] : memref<8x8x128xf32, #tpu.memory_space<vmem>>, vector<1x8x128xf32>
    %72 = vector.shape_cast %71 : vector<1x8x128xf32> to vector<8x128xf32>
    %cst_59 = arith.constant dense<0.000000e+00> : vector<8x128xf32>
    %73 = tpu.matmul %59, %3, %cst_59 {dimension_numbers = #tpu.dot_dimension_numbers<[1], [0], [0], [1], [0, 0, 1, 1], [], []>} : vector<8x128xf32>, vector<128x128xf32>, vector<8x128xf32> -> vector<8x128xf32>
    %74 = arith.addf %72, %73 : vector<8x128xf32>
    %75 = math.tanh %74 : vector<8x128xf32>
    %c3_60 = arith.constant 3 : index
    %c0_61 = arith.constant 0 : index
    %c0_62 = arith.constant 0 : index
    %76 = vector.load %arg2[%c3_60, %c0_61, %c0_62] : memref<8x8x128xf32, #tpu.memory_space<vmem>>, vector<1x8x128xf32>
    %77 = vector.shape_cast %76 : vector<1x8x128xf32> to vector<8x128xf32>
    %cst_63 = arith.constant dense<0.000000e+00> : vector<8x128xf32>
    %78 = tpu.matmul %64, %4, %cst_63 {dimension_numbers = #tpu.dot_dimension_numbers<[1], [0], [0], [1], [0, 0, 1, 1], [], []>} : vector<8x128xf32>, vector<128x128xf32>, vector<8x128xf32> -> vector<8x128xf32>
    %79 = arith.addf %77, %78 : vector<8x128xf32>
    %80 = math.tanh %79 : vector<8x128xf32>
    %c4_64 = arith.constant 4 : index
    %c0_65 = arith.constant 0 : index
    %c0_66 = arith.constant 0 : index
    %81 = vector.load %arg6[%c4_64, %c0_65, %c0_66] : memref<8x8x128xf32, #tpu.memory_space<vmem>>, vector<1x8x128xf32>
    %82 = vector.shape_cast %81 : vector<1x8x128xf32> to vector<8x128xf32>
    %83 = vector.shape_cast %75 : vector<8x128xf32> to vector<1x8x128xf32>
    tpu.vector_store %arg6[%c4_64, %c0_65, %c0_66], %83 {strides = array<i32>} : memref<8x8x128xf32, #tpu.memory_space<vmem>>, vector<1x8x128xf32>,
    %c3_67 = arith.constant 3 : index
    %c0_68 = arith.constant 0 : index
    %c0_69 = arith.constant 0 : index
    %84 = vector.load %arg7[%c3_67, %c0_68, %c0_69] : memref<8x8x128xf32, #tpu.memory_space<vmem>>, vector<1x8x128xf32>
    %85 = vector.shape_cast %84 : vector<1x8x128xf32> to vector<8x128xf32>
    %86 = vector.shape_cast %80 : vector<8x128xf32> to vector<1x8x128xf32>
    tpu.vector_store %arg7[%c3_67, %c0_68, %c0_69], %86 {strides = array<i32>} : memref<8x8x128xf32, #tpu.memory_space<vmem>>, vector<1x8x128xf32>,
    %c5_70 = arith.constant 5 : index
    %c0_71 = arith.constant 0 : index
    %c0_72 = arith.constant 0 : index
    %87 = vector.load %arg1[%c5_70, %c0_71, %c0_72] : memref<8x8x128xf32, #tpu.memory_space<vmem>>, vector<1x8x128xf32>
    %88 = vector.shape_cast %87 : vector<1x8x128xf32> to vector<8x128xf32>
    %cst_73 = arith.constant dense<0.000000e+00> : vector<8x128xf32>
    %89 = tpu.matmul %75, %3, %cst_73 {dimension_numbers = #tpu.dot_dimension_numbers<[1], [0], [0], [1], [0, 0, 1, 1], [], []>} : vector<8x128xf32>, vector<128x128xf32>, vector<8x128xf32> -> vector<8x128xf32>
    %90 = arith.addf %88, %89 : vector<8x128xf32>
    %91 = math.tanh %90 : vector<8x128xf32>
    %c2_74 = arith.constant 2 : index
    %c0_75 = arith.constant 0 : index
    %c0_76 = arith.constant 0 : index
    %92 = vector.load %arg2[%c2_74, %c0_75, %c0_76] : memref<8x8x128xf32, #tpu.memory_space<vmem>>, vector<1x8x128xf32>
    %93 = vector.shape_cast %92 : vector<1x8x128xf32> to vector<8x128xf32>
    %cst_77 = arith.constant dense<0.000000e+00> : vector<8x128xf32>
    %94 = tpu.matmul %80, %4, %cst_77 {dimension_numbers = #tpu.dot_dimension_numbers<[1], [0], [0], [1], [0, 0, 1, 1], [], []>} : vector<8x128xf32>, vector<128x128xf32>, vector<8x128xf32> -> vector<8x128xf32>
    %95 = arith.addf %93, %94 : vector<8x128xf32>
    %96 = math.tanh %95 : vector<8x128xf32>
    %c5_78 = arith.constant 5 : index
    %c0_79 = arith.constant 0 : index
    %c0_80 = arith.constant 0 : index
    %97 = vector.load %arg6[%c5_78, %c0_79, %c0_80] : memref<8x8x128xf32, #tpu.memory_space<vmem>>, vector<1x8x128xf32>
    %98 = vector.shape_cast %97 : vector<1x8x128xf32> to vector<8x128xf32>
    %99 = vector.shape_cast %91 : vector<8x128xf32> to vector<1x8x128xf32>
    tpu.vector_store %arg6[%c5_78, %c0_79, %c0_80], %99 {strides = array<i32>} : memref<8x8x128xf32, #tpu.memory_space<vmem>>, vector<1x8x128xf32>,
    %c2_81 = arith.constant 2 : index
    %c0_82 = arith.constant 0 : index
    %c0_83 = arith.constant 0 : index
    %100 = vector.load %arg7[%c2_81, %c0_82, %c0_83] : memref<8x8x128xf32, #tpu.memory_space<vmem>>, vector<1x8x128xf32>
    %101 = vector.shape_cast %100 : vector<1x8x128xf32> to vector<8x128xf32>
    %102 = vector.shape_cast %96 : vector<8x128xf32> to vector<1x8x128xf32>
    tpu.vector_store %arg7[%c2_81, %c0_82, %c0_83], %102 {strides = array<i32>} : memref<8x8x128xf32, #tpu.memory_space<vmem>>, vector<1x8x128xf32>,
    %c6_84 = arith.constant 6 : index
    %c0_85 = arith.constant 0 : index
    %c0_86 = arith.constant 0 : index
    %103 = vector.load %arg1[%c6_84, %c0_85, %c0_86] : memref<8x8x128xf32, #tpu.memory_space<vmem>>, vector<1x8x128xf32>
    %104 = vector.shape_cast %103 : vector<1x8x128xf32> to vector<8x128xf32>
    %cst_87 = arith.constant dense<0.000000e+00> : vector<8x128xf32>
    %105 = tpu.matmul %91, %3, %cst_87 {dimension_numbers = #tpu.dot_dimension_numbers<[1], [0], [0], [1], [0, 0, 1, 1], [], []>} : vector<8x128xf32>, vector<128x128xf32>, vector<8x128xf32> -> vector<8x128xf32>
    %106 = arith.addf %104, %105 : vector<8x128xf32>
    %107 = math.tanh %106 : vector<8x128xf32>
    %c1_88 = arith.constant 1 : index
    %c0_89 = arith.constant 0 : index
    %c0_90 = arith.constant 0 : index
    %108 = vector.load %arg2[%c1_88, %c0_89, %c0_90] : memref<8x8x128xf32, #tpu.memory_space<vmem>>, vector<1x8x128xf32>
    %109 = vector.shape_cast %108 : vector<1x8x128xf32> to vector<8x128xf32>
    %cst_91 = arith.constant dense<0.000000e+00> : vector<8x128xf32>
    %110 = tpu.matmul %96, %4, %cst_91 {dimension_numbers = #tpu.dot_dimension_numbers<[1], [0], [0], [1], [0, 0, 1, 1], [], []>} : vector<8x128xf32>, vector<128x128xf32>, vector<8x128xf32> -> vector<8x128xf32>
    %111 = arith.addf %109, %110 : vector<8x128xf32>
    %112 = math.tanh %111 : vector<8x128xf32>
    %c6_92 = arith.constant 6 : index
    %c0_93 = arith.constant 0 : index
    %c0_94 = arith.constant 0 : index
    %113 = vector.load %arg6[%c6_92, %c0_93, %c0_94] : memref<8x8x128xf32, #tpu.memory_space<vmem>>, vector<1x8x128xf32>
    %114 = vector.shape_cast %113 : vector<1x8x128xf32> to vector<8x128xf32>
    %115 = vector.shape_cast %107 : vector<8x128xf32> to vector<1x8x128xf32>
    tpu.vector_store %arg6[%c6_92, %c0_93, %c0_94], %115 {strides = array<i32>} : memref<8x8x128xf32, #tpu.memory_space<vmem>>, vector<1x8x128xf32>,
    %c1_95 = arith.constant 1 : index
    %c0_96 = arith.constant 0 : index
    %c0_97 = arith.constant 0 : index
    %116 = vector.load %arg7[%c1_95, %c0_96, %c0_97] : memref<8x8x128xf32, #tpu.memory_space<vmem>>, vector<1x8x128xf32>
    %117 = vector.shape_cast %116 : vector<1x8x128xf32> to vector<8x128xf32>
    %118 = vector.shape_cast %112 : vector<8x128xf32> to vector<1x8x128xf32>
    tpu.vector_store %arg7[%c1_95, %c0_96, %c0_97], %118 {strides = array<i32>} : memref<8x8x128xf32, #tpu.memory_space<vmem>>, vector<1x8x128xf32>,
    %c7_98 = arith.constant 7 : index
    %c0_99 = arith.constant 0 : index
    %c0_100 = arith.constant 0 : index
    %119 = vector.load %arg1[%c7_98, %c0_99, %c0_100] : memref<8x8x128xf32, #tpu.memory_space<vmem>>, vector<1x8x128xf32>
    %120 = vector.shape_cast %119 : vector<1x8x128xf32> to vector<8x128xf32>
    %cst_101 = arith.constant dense<0.000000e+00> : vector<8x128xf32>
    %121 = tpu.matmul %107, %3, %cst_101 {dimension_numbers = #tpu.dot_dimension_numbers<[1], [0], [0], [1], [0, 0, 1, 1], [], []>} : vector<8x128xf32>, vector<128x128xf32>, vector<8x128xf32> -> vector<8x128xf32>
    %122 = arith.addf %120, %121 : vector<8x128xf32>
    %123 = math.tanh %122 : vector<8x128xf32>
    %c0_102 = arith.constant 0 : index
    %c0_103 = arith.constant 0 : index
    %c0_104 = arith.constant 0 : index
    %124 = vector.load %arg2[%c0_102, %c0_103, %c0_104] : memref<8x8x128xf32, #tpu.memory_space<vmem>>, vector<1x8x128xf32>
    %125 = vector.shape_cast %124 : vector<1x8x128xf32> to vector<8x128xf32>
    %cst_105 = arith.constant dense<0.000000e+00> : vector<8x128xf32>
    %126 = tpu.matmul %112, %4, %cst_105 {dimension_numbers = #tpu.dot_dimension_numbers<[1], [0], [0], [1], [0, 0, 1, 1], [], []>} : vector<8x128xf32>, vector<128x128xf32>, vector<8x128xf32> -> vector<8x128xf32>
    %127 = arith.addf %125, %126 : vector<8x128xf32>
    %128 = math.tanh %127 : vector<8x128xf32>
    %c7_106 = arith.constant 7 : index
    %c0_107 = arith.constant 0 : index
    %c0_108 = arith.constant 0 : index
    %129 = vector.load %arg6[%c7_106, %c0_107, %c0_108] : memref<8x8x128xf32, #tpu.memory_space<vmem>>, vector<1x8x128xf32>
    %130 = vector.shape_cast %129 : vector<1x8x128xf32> to vector<8x128xf32>
    %131 = vector.shape_cast %123 : vector<8x128xf32> to vector<1x8x128xf32>
    tpu.vector_store %arg6[%c7_106, %c0_107, %c0_108], %131 {strides = array<i32>} : memref<8x8x128xf32, #tpu.memory_space<vmem>>, vector<1x8x128xf32>,
    %c0_109 = arith.constant 0 : index
    %c0_110 = arith.constant 0 : index
    %c0_111 = arith.constant 0 : index
    %132 = vector.load %arg7[%c0_109, %c0_110, %c0_111] : memref<8x8x128xf32, #tpu.memory_space<vmem>>, vector<1x8x128xf32>
    %133 = vector.shape_cast %132 : vector<1x8x128xf32> to vector<8x128xf32>
    %134 = vector.shape_cast %128 : vector<8x128xf32> to vector<1x8x128xf32>
    tpu.vector_store %arg7[%c0_109, %c0_110, %c0_111], %134 {strides = array<i32>} : memref<8x8x128xf32, #tpu.memory_space<vmem>>, vector<1x8x128xf32>,
    %c0_112 = arith.constant 0 : index
    %c0_113 = arith.constant 0 : index
    %135 = vector.load %arg8[%c0_112, %c0_113] : memref<8x128xf32, #tpu.memory_space<vmem>>, vector<8x128xf32>
    tpu.vector_store %arg8[%c0_112, %c0_113], %123 {strides = array<i32>} : memref<8x128xf32, #tpu.memory_space<vmem>>, vector<8x128xf32>,
    %c0_114 = arith.constant 0 : index
    %c0_115 = arith.constant 0 : index
    %136 = vector.load %arg9[%c0_114, %c0_115] : memref<8x128xf32, #tpu.memory_space<vmem>>, vector<8x128xf32>
    tpu.vector_store %arg9[%c0_114, %c0_115], %128 {strides = array<i32>} : memref<8x128xf32, #tpu.memory_space<vmem>>, vector<8x128xf32>,
    return
  }
  func.func @transform_0(%arg0: i32) -> (i32, i32, i32) {
    %c0_i32 = arith.constant 0 : i32
    %c0_i32_0 = arith.constant 0 : i32
    %c0_i32_1 = arith.constant 0 : i32
    return %arg0, %c0_i32, %c0_i32_0 : i32, i32, i32
  }
  func.func @transform_1(%arg0: i32) -> (i32, i32, i32) {
    %c0_i32 = arith.constant 0 : i32
    %0 = arith.subi %c0_i32, %arg0 : i32
    %c0_i32_0 = arith.constant 0 : i32
    %c0_i32_1 = arith.constant 0 : i32
    %c0_i32_2 = arith.constant 0 : i32
    return %0, %c0_i32_0, %c0_i32_1 : i32, i32, i32
  }
  func.func @transform_2(%arg0: i32) -> (i32, i32) {
    %c0_i32 = arith.constant 0 : i32
    %c0_i32_0 = arith.constant 0 : i32
    %c0_i32_1 = arith.constant 0 : i32
    return %c0_i32, %c0_i32_0 : i32, i32
  }
  func.func @transform_3(%arg0: i32) -> (i32, i32) {
    %c0_i32 = arith.constant 0 : i32
    %c0_i32_0 = arith.constant 0 : i32
    %c0_i32_1 = arith.constant 0 : i32
    return %c0_i32, %c0_i32_0 : i32, i32
  }
  func.func @transform_4(%arg0: i32) -> (i32, i32) {
    %c0_i32 = arith.constant 0 : i32
    %c0_i32_0 = arith.constant 0 : i32
    %c0_i32_1 = arith.constant 0 : i32
    return %c0_i32, %c0_i32_0 : i32, i32
  }
  func.func @transform_5(%arg0: i32) -> (i32, i32, i32) {
    %c0_i32 = arith.constant 0 : i32
    %c0_i32_0 = arith.constant 0 : i32
    %c0_i32_1 = arith.constant 0 : i32
    return %arg0, %c0_i32, %c0_i32_0 : i32, i32, i32
  }
  func.func @transform_6(%arg0: i32) -> (i32, i32, i32) {
    %c0_i32 = arith.constant 0 : i32
    %0 = arith.subi %c0_i32, %arg0 : i32
    %c0_i32_0 = arith.constant 0 : i32
    %c0_i32_1 = arith.constant 0 : i32
    %c0_i32_2 = arith.constant 0 : i32
    return %0, %c0_i32_0, %c0_i32_1 : i32, i32, i32
  }
}

</mosaic_0001>

<bundles_post_ra>
// kernel: tpu_custom_call.1
= control target key start
LH: loop header
LB: loop body
LE: loop exit
PB: predicated region body
PF: predicated region fallthrough
CT: control target
= control target key end

     0   :  { %12 = vsyncpa [#allocation5], 0  ;;  %s3266_s0 = inlined_call_operand.hbm [shape: f32[8,8,128], index: 0, kind: input, shape index: {}]   ;;  %s3267_s1 = inlined_call_operand.hbm [shape: f32[8,8,128], index: 1, kind: input, shape index: {}]   ;;  %s3268_s2 = inlined_call_operand.hbm [shape: f32[128,128], index: 2, kind: input, shape index: {}]   ;;  %s3269_s3 = inlined_call_operand.hbm [shape: f32[128,128], index: 3, kind: input, shape index: {}]   ;;  %s3270_s4 = inlined_call_operand.vmem [shape: f32[8,128], index: 4, kind: input, shape index: {}]   ;;  %s3271_s5 = inlined_call_operand.hbm [shape: f32[8,8,128], index: 5, kind: output, shape index: {0}]   ;;  %s3272_s6 = inlined_call_operand.hbm [shape: f32[8,8,128], index: 6, kind: output, shape index: {1}]  }
   0x1   :  { %13 = vsyncpa [#allocation8], 0 }
   0x2   :  { %14 = vsyncpa [#allocation11], 0 }
   0x3   :  { %15 = vsyncpa [#allocation6], 0 }
   0x4   :  { %16 = vsyncpa [#allocation14], 0  ;;  %s2786_s21 = smov [#allocation7]   ;;  %s2787_s23 = smov [#allocation4]  }
   0x5   :  { %s38_s22 = sshll.u32 %s2786_s21, 4  ;;  %s22_s24 = sshll.u32 %s2787_s23, 4  ;;  %s39_s22 = int_to_ptr.vmem [resolvable:$true] %s38_s22  ;;  %s2832_s24 = int_to_ptr.vmem [resolvable:$true] %s22_s24 }
   0x6   :  { %s2644_s27 = scalar_lea.hbm %s3267_s1, 1024 }
   0x7   :  { %p2645_p0 = scmp.ne.s32.totalorder %s3267_s1, %s2644_s27  ;;  %p2648_p1 = scmp.lt.u32.totalorder %s2644_s27, %s3267_s1 }
   0x9   :  { %p2650_p2 = pnand %p2648_p1, %p2645_p0 }
   0xb   :  { %2653 = shalt.err (!%p2650_p2)
}
   0xc   :  { %s2654_s8 = scalar_lea.vmem %s39_s22, 1024  ;;  %p2659_p4 = scmp.lt.s32.totalorder %s39_s22, %s39_s22 }
   0xd   :  { %p2655_p3 = scmp.ne.s32.totalorder %s39_s22, %s2654_s8  ;;  %p2660_p5 = scmp.lt.s32.totalorder %s2654_s8, %s2654_s8 }
   0xf   :  { %p2661_p6 = por %p2660_p5, %p2659_p4 }
  0x11   :  { %p2662_p7 = pnand %p2661_p6, %p2655_p3 }
  0x13   :  { %2665 = shalt.err (!%p2662_p7)
}
  0x14   :  { %s2788_s9 = smov 128   ;;  %s2789_s10 = smov 8  }
  0x15   :  { %44 = dma.hbm_to_vmem [thread:$0]  %s3267_s1, 1024, %s39_s22, [#allocation8], %s2788_s9, %s2788_s9, %s2789_s10  }
  0x16   :  { %s2666_s15 = scalar_lea.hbm %s3266_s0, 1024 }
  0x17   :  { %p2667_p8 = scmp.ne.s32.totalorder %s3266_s0, %s2666_s15  ;;  %p2670_p9 = scmp.lt.u32.totalorder %s2666_s15, %s3266_s0 }
  0x19   :  { %p2672_p10 = pnand %p2670_p9, %p2667_p8 }
  0x1b   :  { %2675 = shalt.err (!%p2672_p10)
}
  0x1c   :  { %s2676_s20 = scalar_lea.vmem %s2832_s24, 1024  ;;  %p2681_p12 = scmp.lt.s32.totalorder %s2832_s24, %s2832_s24 }
  0x1d   :  { %p2677_p11 = scmp.ne.s32.totalorder %s2832_s24, %s2676_s20  ;;  %p2682_p13 = scmp.lt.s32.totalorder %s2676_s20, %s2676_s20 }
  0x1f   :  { %p2683_p0 = por %p2682_p13, %p2681_p12 }
  0x21   :  { %p2684_p1 = pnand %p2683_p0, %p2677_p11 }
  0x23   :  { %2687 = shalt.err (!%p2684_p1)
}
  0x24   :  { %28 = dma.hbm_to_vmem [thread:$0]  %s3266_s0, 1024, %s2832_s24, [#allocation5], %s2788_s9, %s2788_s9, %s2789_s10  }
  0x25   :  { %s2790_s22 = smov [#allocation9]   ;;  %s2791_s25 = smov [#allocation10]  }
  0x26   :  { %s50_s23 = sshll.u32 %s2790_s22, 4  ;;  %s62_s26 = sshll.u32 %s2791_s25, 4  ;;  %s51_s23 = int_to_ptr.vmem [resolvable:$true] %s50_s23  ;;  %s2869_s26 = int_to_ptr.vmem [resolvable:$true] %s62_s26 }
  0x27   :  { %s2688_s29 = scalar_lea.hbm %s3268_s2, 2048 }
  0x28   :  { %p2689_p2 = scmp.ne.s32.totalorder %s3268_s2, %s2688_s29  ;;  %p2692_p3 = scmp.lt.u32.totalorder %s2688_s29, %s3268_s2 }
  0x2a   :  { %p2694_p4 = pnand %p2692_p3, %p2689_p2 }
  0x2c   :  { %2697 = shalt.err (!%p2694_p4)
}
  0x2d   :  { %s2698_s0 = scalar_lea.vmem %s51_s23, 2048  ;;  %p2703_p6 = scmp.lt.s32.totalorder %s51_s23, %s51_s23 }
  0x2e   :  { %p2699_p5 = scmp.ne.s32.totalorder %s51_s23, %s2698_s0  ;;  %p2704_p7 = scmp.lt.s32.totalorder %s2698_s0, %s2698_s0 }
  0x30   :  { %p2705_p8 = por %p2704_p7, %p2703_p6 }
  0x32   :  { %p2706_p9 = pnand %p2705_p8, %p2699_p5 }
  0x34   :  { %2709 = shalt.err (!%p2706_p9)
}
  0x35   :  { %56 = dma.hbm_to_vmem [thread:$0]  %s3268_s2, 2048, %s51_s23, [#allocation8], %s2788_s9, %s2788_s9, %s2789_s10  }
  0x36   :  { %s2710_s15 = scalar_lea.hbm %s3269_s3, 2048 }
  0x37   :  { %p2711_p10 = scmp.ne.s32.totalorder %s3269_s3, %s2710_s15  ;;  %p2714_p11 = scmp.lt.u32.totalorder %s2710_s15, %s3269_s3 }
  0x39   :  { %p2716_p12 = pnand %p2714_p11, %p2711_p10 }
  0x3b   :  { %2719 = shalt.err (!%p2716_p12)
}
  0x3c   :  { %s2720_s20 = scalar_lea.vmem %s2869_s26, 2048  ;;  %p2725_p0 = scmp.lt.s32.totalorder %s2869_s26, %s2869_s26 }
  0x3d   :  { %p2721_p13 = scmp.ne.s32.totalorder %s2869_s26, %s2720_s20  ;;  %p2726_p1 = scmp.lt.s32.totalorder %s2720_s20, %s2720_s20 }
  0x3f   :  { %p2727_p2 = por %p2726_p1, %p2725_p0 }
  0x41   :  { %p2728_p3 = pnand %p2727_p2, %p2721_p13 }
  0x43   :  { %2731 = shalt.err (!%p2728_p3)
}
  0x44   :  { %68 = dma.hbm_to_vmem [thread:$0]  %s3269_s3, 2048, %s2869_s26, [#allocation11], %s2788_s9, %s2788_s9, %s2789_s10  }
  0x45   :  { %2776 = dma.done.wait [#allocation5], 1024  }
  0x46   :  { %2777 = vsyncadd [#allocation5], 4294966272 }
  0x47   :  { %2778 = dma.done.wait [#allocation8], 3072  }
  0x48   :  { %2779 = vsyncadd [#allocation8], 4294964224 }
  0x49   :  { %2780 = dma.done.wait [#allocation11], 2048  }
  0x4a   :  { %2781 = vsyncadd [#allocation11], 4294965248  ;;  %v2792_v0 = vmov 0.0|0.0   ;;  %vm2793_vm0 = vmmov 0   ;;  %v2794_v1 = vmov 0.0   ;;  %v94_v2 = vld [vmem:[#allocation9] sm:$0xff] }
  0x4b   :  { %2217 = vmatprep.subr.bf16.mxu0 %v2792_v0  ;;  %2241 = vmatprep.subr.bf16.mxu1 %v2792_v0  ;;  %v95_v3 = vld [vmem:[#allocation9 + $0x8] sm:$0xff]  ;;  %v110_v4 = vld [vmem:[#allocation10] sm:$0xff]  ;;  %v96_v7 = vld [vmem:[#allocation9 + $0x10] sm:$0xff]  ;;  %s2796_s23 = smov [#allocation13]  }
  0x4c   :  { %1689 = vmatprep.mubr.msk.f32.mxu0 %vm2793_vm0, %v2794_v1  ;;  %1724 = vmatprep.mubr.msk.f32.mxu1 %vm2793_vm0, %v2794_v1  ;;  %v2912_v5 = vpack.c.bf16 %v95_v3, %v94_v2  ;;  %v111_v6 = vld [vmem:[#allocation10 + $0x8] sm:$0xff]  ;;  %v97_v8 = vld [vmem:[#allocation9 + $0x18] sm:$0xff]  ;;  %v112_v10 = vld [vmem:[#allocation10 + $0x10] sm:$0xff]  ;;  %s1363_s25 = sshll.u32 %s2796_s23, 4  ;;  %s3229_s25 = int_to_ptr.vmem [resolvable:$true] %s1363_s25 }
  0x4d   :  { %v2914_v9 = vpack.c.bf16 %v111_v6, %v110_v4  ;;  %v113_v11 = vld [vmem:[#allocation10 + $0x18] sm:$0xff]  ;;  %v2917_v12 = vpack.c.bf16 %v97_v8, %v96_v7  ;;  %v98_v14 = vld [vmem:[#allocation9 + $0x20] sm:$0xff]  ;;  %v99_v15 = vld [vmem:[#allocation9 + $0x28] sm:$0xff] }
  0x4e   :  { %2219 = vmatpush3.bf16.msra.mxu0 %v2912_v5  ;;  %v2921_v13 = vpack.c.bf16 %v113_v11, %v112_v10  ;;  %v114_v16 = vld [vmem:[#allocation10 + $0x20] sm:$0xff]  ;;  %v115_v17 = vld [vmem:[#allocation10 + $0x28] sm:$0xff]  ;;  %v2925_v18 = vpack.c.bf16 %v99_v15, %v98_v14  ;;  %v100_v20 = vld [vmem:[#allocation9 + $0x30] sm:$0xff] }
  0x4f   :  { %2243 = vmatpush3.bf16.msra.mxu1 %v2914_v9  ;;  %2220 = vmatprep.subr.bf16.mxu0 %v2792_v0  ;;  %v2929_v19 = vpack.c.bf16 %v115_v17, %v114_v16  ;;  %v101_v21 = vld [vmem:[#allocation9 + $0x38] sm:$0xff]  ;;  %v116_v22 = vld [vmem:[#allocation10 + $0x30] sm:$0xff]  ;;  %v102_v26 = vld [vmem:[#allocation9 + $0x40] sm:$0xff] }
  0x50   :  { %2244 = vmatprep.subr.bf16.mxu1 %v2792_v0  ;;  %v117_v23 = vld [vmem:[#allocation10 + $0x38] sm:$0xff]  ;;  %v2933_v24 = vpack.c.bf16 %v101_v21, %v100_v20  ;;  %v103_v27 = vld [vmem:[#allocation9 + $0x48] sm:$0xff]  ;;  %v118_v28 = vld [vmem:[#allocation10 + $0x40] sm:$0xff] }
  0x51   :  { %v2937_v25 = vpack.c.bf16 %v117_v23, %v116_v22  ;;  %v119_v29 = vld [vmem:[#allocation10 + $0x48] sm:$0xff]  ;;  %v2941_v30 = vpack.c.bf16 %v103_v27, %v102_v26  ;;  %v104_v32 = vld [vmem:[#allocation9 + $0x50] sm:$0xff]  ;;  %v105_v33 = vld [vmem:[#allocation9 + $0x58] sm:$0xff] }
  0x52   :  { %2222 = vmatpush3.bf16.msra.mxu0 %v2917_v12  ;;  %v2945_v31 = vpack.c.bf16 %v119_v29, %v118_v28  ;;  %v120_v34 = vld [vmem:[#allocation10 + $0x50] sm:$0xff]  ;;  %v121_v35 = vld [vmem:[#allocation10 + $0x58] sm:$0xff]  ;;  %v2949_v36 = vpack.c.bf16 %v105_v33, %v104_v32  ;;  %v106_v38 = vld [vmem:[#allocation9 + $0x60] sm:$0xff] }
  0x53   :  { %2246 = vmatpush3.bf16.msra.mxu1 %v2921_v13  ;;  %2223 = vmatprep.subr.bf16.mxu0 %v2792_v0  ;;  %v2953_v37 = vpack.c.bf16 %v121_v35, %v120_v34  ;;  %v107_v39 = vld [vmem:[#allocation9 + $0x68] sm:$0xff]  ;;  %v122_v40 = vld [vmem:[#allocation10 + $0x60] sm:$0xff]  ;;  %v108_v44 = vld [vmem:[#allocation9 + $0x70] sm:$0xff] }
  0x54   :  { %2247 = vmatprep.subr.bf16.mxu1 %v2792_v0  ;;  %v123_v41 = vld [vmem:[#allocation10 + $0x68] sm:$0xff]  ;;  %v2957_v42 = vpack.c.bf16 %v107_v39, %v106_v38  ;;  %v109_v45 = vld [vmem:[#allocation9 + $0x78] sm:$0xff]  ;;  %v124_v46 = vld [vmem:[#allocation10 + $0x70] sm:$0xff] }
  0x55   :  { %v2961_v43 = vpack.c.bf16 %v123_v41, %v122_v40  ;;  %v125_v47 = vld [vmem:[#allocation10 + $0x78] sm:$0xff]  ;;  %v2965_v48 = vpack.c.bf16 %v109_v45, %v108_v44  ;;  %v91_v50 = vld [vmem:[%s3270_s4] sm:$0xff]  ;;  %v279_v61 = vld [vmem:[#allocation4 + $0x8] sm:$0xff]  ;;  %s2795_s4 = smov [#allocation12]  }
  0x56   :  { %2225 = vmatpush3.bf16.msra.mxu0 %v2925_v18  ;;  %v2969_v49 = vpack.c.bf16 %v125_v47, %v124_v46  ;;  %v128_v51 = vld [vmem:[#allocation4] sm:$0xff]  ;;  %v202_v52 = vld [vmem:[#allocation7 + $0x38] sm:$0xff]  ;;  %v353_v62 = vld [vmem:[#allocation7 + $0x30] sm:$0xff]  ;;  %s1347_s22 = sshll.u32 %s2795_s4, 4  ;;  %s1348_s22 = int_to_ptr.vmem [resolvable:$true] %s1347_s22 }
  0x57   :  { %2249 = vmatpush3.bf16.msra.mxu1 %v2929_v19  ;;  %2226 = vmatprep.subr.bf16.mxu0 %v2792_v0  ;;  %v431_v11 = vld [vmem:[#allocation4 + $0x10] sm:$0xff]  ;;  %v505_v14 = vld [vmem:[#allocation7 + $0x28] sm:$0xff]  ;;  %v583_v27 = vld [vmem:[#allocation4 + $0x18] sm:$0xff]  ;;  %s2732_s26 = scalar_lea.vmem %s1348_s22, 1024  ;;  %p2737_p5 = scmp.lt.s32.totalorder %s1348_s22, %s1348_s22 }
  0x58   :  { %2250 = vmatprep.subr.bf16.mxu1 %v2792_v0  ;;  %v657_v28 = vld [vmem:[#allocation7 + $0x20] sm:$0xff]  ;;  %v809_v44 = vld [vmem:[#allocation7 + $0x18] sm:$0xff]  ;;  %p2733_p4 = scmp.ne.s32.totalorder %s1348_s22, %s2732_s26  ;;  %p2738_p6 = scmp.lt.s32.totalorder %s2732_s26, %s2732_s26 }
  0x59   :  { %v735_v41 = vld [vmem:[#allocation4 + $0x20] sm:$0xff] }
  0x5a   :  { %2228 = vmatpush3.bf16.msra.mxu0 %v2933_v24  ;;  %p2739_p7 = por %p2738_p6, %p2737_p5 }
  0x5b   :  { %2252 = vmatpush3.bf16.msra.mxu1 %v2937_v25  ;;  %2229 = vmatprep.subr.bf16.mxu0 %v2792_v0 }
  0x5c   :  { %2253 = vmatprep.subr.bf16.mxu1 %v2792_v0  ;;  %p2740_p8 = pnand %p2739_p7, %p2733_p4 }
  0x5e   :  { %2231 = vmatpush3.bf16.msra.mxu0 %v2941_v30 }
  0x5f   :  { %2255 = vmatpush3.bf16.msra.mxu1 %v2945_v31  ;;  %2232 = vmatprep.subr.bf16.mxu0 %v2792_v0 }
  0x60   :  { %2256 = vmatprep.subr.bf16.mxu1 %v2792_v0 }
  0x62   :  { %2234 = vmatpush3.bf16.msra.mxu0 %v2949_v36 }
  0x63   :  { %2258 = vmatpush3.bf16.msra.mxu1 %v2953_v37  ;;  %2235 = vmatprep.subr.bf16.mxu0 %v2792_v0 }
  0x64   :  { %2259 = vmatprep.subr.bf16.mxu1 %v2792_v0 }
  0x66   :  { %2237 = vmatpush3.bf16.msra.mxu0 %v2957_v42 }
  0x67   :  { %2261 = vmatpush3.bf16.msra.mxu1 %v2961_v43  ;;  %2238 = vmatprep.subr.bf16.mxu0 %v2792_v0 }
  0x68   :  { %2262 = vmatprep.subr.bf16.mxu1 %v2792_v0 }
  0x6a   :  { %2240 = vmatpush3.bf16.msra.mxu0 %v2965_v48 }
  0x6b   :  { %2264 = vmatpush3.bf16.msra.mxu1 %v2969_v49  ;;  %2265 = vmatprep.subr.bf16.mxu0 %v2792_v0 }
  0x6c   :  { %2289 = vmatprep.subr.bf16.mxu1 %v2792_v0 }
  0x6d   :  { %1690 = vmatmul.mubr.f32.vlgmr.msra.gmra.mrb[0].mxu0 %v91_v50 }
  0x6e   :  { %1725 = vmatmul.mubr.f32.vlgmr.msra.gmra.mrb[0].mxu1 %v91_v50  ;;  %2267 = vmatpush3.bf16.msra.mxu0 %v2912_v5 }
  0x6f   :  { %2291 = vmatpush3.bf16.msra.mxu1 %v2914_v9  ;;  %2268 = vmatprep.subr.bf16.mxu0 %v2792_v0 }
  0x70   :  { %2292 = vmatprep.subr.bf16.mxu1 %v2792_v0  ;;  %1759 = vmatprep.mubr.msk.f32.mxu0 %vm2793_vm0, %v2794_v1 }
  0x71   :  { %1794 = vmatprep.mubr.msk.f32.mxu1 %vm2793_vm0, %v2794_v1 }
  0x72   :  { %2270 = vmatpush3.bf16.msra.mxu0 %v2917_v12 }
  0x73   :  { %2294 = vmatpush3.bf16.msra.mxu1 %v2921_v13  ;;  %2271 = vmatprep.subr.bf16.mxu0 %v2792_v0 }
  0x74   :  { %2295 = vmatprep.subr.bf16.mxu1 %v2792_v0 }
  0x76   :  { %2273 = vmatpush3.bf16.msra.mxu0 %v2925_v18 }
  0x77   :  { %2297 = vmatpush3.bf16.msra.mxu1 %v2929_v19  ;;  %2274 = vmatprep.subr.bf16.mxu0 %v2792_v0 }
  0x78   :  { %2298 = vmatprep.subr.bf16.mxu1 %v2792_v0 }
  0x7a   :  { %2276 = vmatpush3.bf16.msra.mxu0 %v2933_v24 }
  0x7b   :  { %2300 = vmatpush3.bf16.msra.mxu1 %v2937_v25  ;;  %2277 = vmatprep.subr.bf16.mxu0 %v2792_v0 }
  0x7c   :  { %2301 = vmatprep.subr.bf16.mxu1 %v2792_v0 }
  0x7e   :  { %2279 = vmatpush3.bf16.msra.mxu0 %v2941_v30 }
  0x7f   :  { %2303 = vmatpush3.bf16.msra.mxu1 %v2945_v31  ;;  %2280 = vmatprep.subr.bf16.mxu0 %v2792_v0 }
  0x80   :  { %2304 = vmatprep.subr.bf16.mxu1 %v2792_v0 }
  0x82   :  { %2282 = vmatpush3.bf16.msra.mxu0 %v2949_v36 }
  0x83   :  { %2306 = vmatpush3.bf16.msra.mxu1 %v2953_v37  ;;  %2283 = vmatprep.subr.bf16.mxu0 %v2792_v0 }
  0x84   :  { %2307 = vmatprep.subr.bf16.mxu1 %v2792_v0 }
  0x86   :  { %2285 = vmatpush3.bf16.msra.mxu0 %v2957_v42 }
  0x87   :  { %2309 = vmatpush3.bf16.msra.mxu1 %v2961_v43  ;;  %2286 = vmatprep.subr.bf16.mxu0 %v2792_v0 }
  0x88   :  { %2310 = vmatprep.subr.bf16.mxu1 %v2792_v0 }
  0x8a   :  { %2288 = vmatpush3.bf16.msra.mxu0 %v2965_v48 }
  0x8b   :  { %2312 = vmatpush3.bf16.msra.mxu1 %v2969_v49  ;;  %2313 = vmatprep.subr.bf16.mxu0 %v2792_v0 }
  0x8c   :  { %2337 = vmatprep.subr.bf16.mxu1 %v2792_v0 }
 0x140   :  { %v195_v53 = vpop.f32.mrb[0].mxu0 }
 0x141   :  { %v199_v54 = vadd.f32 %v195_v53, %v128_v51  ;;  %v269_v55 = vpop.f32.mrb[0].mxu1  ;;  %v1691_v56 = vpop.f32.mrb[1].mxu0 }
 0x142   :  { %v273_v57 = vadd.f32 %v269_v55, %v202_v52  ;;  %v1726_v58 = vpop.f32.mrb[1].mxu1  ;;  %v887_v55 = vld [vmem:[#allocation4 + $0x28] sm:$0xff]  ;;  %v961_v56 = vld [vmem:[#allocation7 + $0x10] sm:$0xff] }
 0x143   :  { %2612 = vtanh.f32 %v199_v54 }
 0x144   :  { %2614 = vtanh.f32 %v273_v57 }
 0x14d   :  { %v2613_v59 = vpop.eup %2612 }
 0x14e   :  { %v2615_v60 = vpop.eup %2614  ;;  %275 = vst [vmem:[#allocation12] sm:$0xff] %v2613_v59  ;;  %1760 = vmatmul.mubr.f32.vlgmr.msra.gmra.mrb[2].mxu0 %v2613_v59 }
 0x14f   :  { %277 = vst [vmem:[#allocation13 + $0x38] sm:$0xff] %v2615_v60  ;;  %1795 = vmatmul.mubr.f32.vlgmr.msra.gmra.mrb[2].mxu1 %v2615_v60  ;;  %2315 = vmatpush3.bf16.msra.mxu0 %v2912_v5 }
 0x150   :  { %2339 = vmatpush3.bf16.msra.mxu1 %v2914_v9  ;;  %2316 = vmatprep.subr.bf16.mxu0 %v2792_v0 }
 0x151   :  { %2340 = vmatprep.subr.bf16.mxu1 %v2792_v0  ;;  %1829 = vmatprep.mubr.msk.f32.mxu0 %vm2793_vm0, %v2794_v1 }
 0x152   :  { %1864 = vmatprep.mubr.msk.f32.mxu1 %vm2793_vm0, %v2794_v1 }
 0x153   :  { %2318 = vmatpush3.bf16.msra.mxu0 %v2917_v12 }
 0x154   :  { %2342 = vmatpush3.bf16.msra.mxu1 %v2921_v13  ;;  %2319 = vmatprep.subr.bf16.mxu0 %v2792_v0 }
 0x155   :  { %2343 = vmatprep.subr.bf16.mxu1 %v2792_v0 }
 0x157   :  { %2321 = vmatpush3.bf16.msra.mxu0 %v2925_v18 }
 0x158   :  { %2345 = vmatpush3.bf16.msra.mxu1 %v2929_v19  ;;  %2322 = vmatprep.subr.bf16.mxu0 %v2792_v0 }
 0x159   :  { %2346 = vmatprep.subr.bf16.mxu1 %v2792_v0 }
 0x15b   :  { %2324 = vmatpush3.bf16.msra.mxu0 %v2933_v24 }
 0x15c   :  { %2348 = vmatpush3.bf16.msra.mxu1 %v2937_v25  ;;  %2325 = vmatprep.subr.bf16.mxu0 %v2792_v0 }
 0x15d   :  { %2349 = vmatprep.subr.bf16.mxu1 %v2792_v0 }
 0x15f   :  { %2327 = vmatpush3.bf16.msra.mxu0 %v2941_v30 }
 0x160   :  { %2351 = vmatpush3.bf16.msra.mxu1 %v2945_v31  ;;  %2328 = vmatprep.subr.bf16.mxu0 %v2792_v0 }
 0x161   :  { %2352 = vmatprep.subr.bf16.mxu1 %v2792_v0 }
 0x163   :  { %2330 = vmatpush3.bf16.msra.mxu0 %v2949_v36 }
 0x164   :  { %2354 = vmatpush3.bf16.msra.mxu1 %v2953_v37  ;;  %2331 = vmatprep.subr.bf16.mxu0 %v2792_v0 }
 0x165   :  { %2355 = vmatprep.subr.bf16.mxu1 %v2792_v0 }
 0x167   :  { %2333 = vmatpush3.bf16.msra.mxu0 %v2957_v42 }
 0x168   :  { %2357 = vmatpush3.bf16.msra.mxu1 %v2961_v43  ;;  %2334 = vmatprep.subr.bf16.mxu0 %v2792_v0 }
 0x169   :  { %2358 = vmatprep.subr.bf16.mxu1 %v2792_v0 }
 0x16b   :  { %2336 = vmatpush3.bf16.msra.mxu0 %v2965_v48 }
 0x16c   :  { %2360 = vmatpush3.bf16.msra.mxu1 %v2969_v49  ;;  %2361 = vmatprep.subr.bf16.mxu0 %v2792_v0 }
 0x16d   :  { %2385 = vmatprep.subr.bf16.mxu1 %v2792_v0 }
 0x221   :  { %v346_v63 = vpop.f32.mrb[2].mxu0 }
 0x222   :  { %v350_v2 = vadd.f32 %v346_v63, %v279_v61  ;;  %v420_v3 = vpop.f32.mrb[2].mxu1  ;;  %v1761_v4 = vpop.f32.mrb[3].mxu0 }
 0x223   :  { %v424_v6 = vadd.f32 %v420_v3, %v353_v62  ;;  %v1796_v7 = vpop.f32.mrb[3].mxu1 }
 0x224   :  { %2616 = vtanh.f32 %v350_v2 }
 0x225   :  { %2618 = vtanh.f32 %v424_v6 }
 0x22e   :  { %v2617_v8 = vpop.eup %2616 }
 0x22f   :  { %v2619_v10 = vpop.eup %2618  ;;  %427 = vst [vmem:[#allocation12 + $0x8] sm:$0xff] %v2617_v8  ;;  %1830 = vmatmul.mubr.f32.vlgmr.msra.gmra.mrb[4].mxu0 %v2617_v8 }
 0x230   :  { %429 = vst [vmem:[#allocation13 + $0x30] sm:$0xff] %v2619_v10  ;;  %1865 = vmatmul.mubr.f32.vlgmr.msra.gmra.mrb[4].mxu1 %v2619_v10  ;;  %2363 = vmatpush3.bf16.msra.mxu0 %v2912_v5 }
 0x231   :  { %2387 = vmatpush3.bf16.msra.mxu1 %v2914_v9  ;;  %2364 = vmatprep.subr.bf16.mxu0 %v2792_v0 }
 0x232   :  { %2388 = vmatprep.subr.bf16.mxu1 %v2792_v0  ;;  %1899 = vmatprep.mubr.msk.f32.mxu0 %vm2793_vm0, %v2794_v1 }
 0x233   :  { %1934 = vmatprep.mubr.msk.f32.mxu1 %vm2793_vm0, %v2794_v1 }
 0x234   :  { %2366 = vmatpush3.bf16.msra.mxu0 %v2917_v12 }
 0x235   :  { %2390 = vmatpush3.bf16.msra.mxu1 %v2921_v13  ;;  %2367 = vmatprep.subr.bf16.mxu0 %v2792_v0 }
 0x236   :  { %2391 = vmatprep.subr.bf16.mxu1 %v2792_v0 }
 0x238   :  { %2369 = vmatpush3.bf16.msra.mxu0 %v2925_v18 }
 0x239   :  { %2393 = vmatpush3.bf16.msra.mxu1 %v2929_v19  ;;  %2370 = vmatprep.subr.bf16.mxu0 %v2792_v0 }
 0x23a   :  { %2394 = vmatprep.subr.bf16.mxu1 %v2792_v0 }
 0x23c   :  { %2372 = vmatpush3.bf16.msra.mxu0 %v2933_v24 }
 0x23d   :  { %2396 = vmatpush3.bf16.msra.mxu1 %v2937_v25  ;;  %2373 = vmatprep.subr.bf16.mxu0 %v2792_v0 }
 0x23e   :  { %2397 = vmatprep.subr.bf16.mxu1 %v2792_v0 }
 0x240   :  { %2375 = vmatpush3.bf16.msra.mxu0 %v2941_v30 }
 0x241   :  { %2399 = vmatpush3.bf16.msra.mxu1 %v2945_v31  ;;  %2376 = vmatprep.subr.bf16.mxu0 %v2792_v0 }
 0x242   :  { %2400 = vmatprep.subr.bf16.mxu1 %v2792_v0 }
 0x244   :  { %2378 = vmatpush3.bf16.msra.mxu0 %v2949_v36 }
 0x245   :  { %2402 = vmatpush3.bf16.msra.mxu1 %v2953_v37  ;;  %2379 = vmatprep.subr.bf16.mxu0 %v2792_v0 }
 0x246   :  { %2403 = vmatprep.subr.bf16.mxu1 %v2792_v0 }
 0x248   :  { %2381 = vmatpush3.bf16.msra.mxu0 %v2957_v42 }
 0x249   :  { %2405 = vmatpush3.bf16.msra.mxu1 %v2961_v43  ;;  %2382 = vmatprep.subr.bf16.mxu0 %v2792_v0 }
 0x24a   :  { %2406 = vmatprep.subr.bf16.mxu1 %v2792_v0 }
 0x24c   :  { %2384 = vmatpush3.bf16.msra.mxu0 %v2965_v48 }
 0x24d   :  { %2408 = vmatpush3.bf16.msra.mxu1 %v2969_v49  ;;  %2409 = vmatprep.subr.bf16.mxu0 %v2792_v0 }
 0x24e   :  { %2433 = vmatprep.subr.bf16.mxu1 %v2792_v0 }
 0x302   :  { %v498_v15 = vpop.f32.mrb[4].mxu0 }
 0x303   :  { %v502_v16 = vadd.f32 %v498_v15, %v431_v11  ;;  %v572_v17 = vpop.f32.mrb[4].mxu1  ;;  %v1831_v20 = vpop.f32.mrb[5].mxu0 }
 0x304   :  { %v576_v21 = vadd.f32 %v572_v17, %v505_v14  ;;  %v1866_v22 = vpop.f32.mrb[5].mxu1 }
 0x305   :  { %2620 = vtanh.f32 %v502_v16 }
 0x306   :  { %2622 = vtanh.f32 %v576_v21 }
 0x30f   :  { %v2621_v23 = vpop.eup %2620 }
 0x310   :  { %v2623_v26 = vpop.eup %2622  ;;  %579 = vst [vmem:[#allocation12 + $0x10] sm:$0xff] %v2621_v23  ;;  %1900 = vmatmul.mubr.f32.vlgmr.msra.gmra.mrb[6].mxu0 %v2621_v23 }
 0x311   :  { %581 = vst [vmem:[#allocation13 + $0x28] sm:$0xff] %v2623_v26  ;;  %1935 = vmatmul.mubr.f32.vlgmr.msra.gmra.mrb[6].mxu1 %v2623_v26  ;;  %2411 = vmatpush3.bf16.msra.mxu0 %v2912_v5 }
 0x312   :  { %2435 = vmatpush3.bf16.msra.mxu1 %v2914_v9  ;;  %2412 = vmatprep.subr.bf16.mxu0 %v2792_v0 }
 0x313   :  { %2436 = vmatprep.subr.bf16.mxu1 %v2792_v0  ;;  %1969 = vmatprep.mubr.msk.f32.mxu0 %vm2793_vm0, %v2794_v1 }
 0x314   :  { %2004 = vmatprep.mubr.msk.f32.mxu1 %vm2793_vm0, %v2794_v1 }
 0x315   :  { %2414 = vmatpush3.bf16.msra.mxu0 %v2917_v12 }
 0x316   :  { %2438 = vmatpush3.bf16.msra.mxu1 %v2921_v13  ;;  %2415 = vmatprep.subr.bf16.mxu0 %v2792_v0 }
 0x317   :  { %2439 = vmatprep.subr.bf16.mxu1 %v2792_v0 }
 0x319   :  { %2417 = vmatpush3.bf16.msra.mxu0 %v2925_v18 }
 0x31a   :  { %2441 = vmatpush3.bf16.msra.mxu1 %v2929_v19  ;;  %2418 = vmatprep.subr.bf16.mxu0 %v2792_v0 }
 0x31b   :  { %2442 = vmatprep.subr.bf16.mxu1 %v2792_v0 }
 0x31d   :  { %2420 = vmatpush3.bf16.msra.mxu0 %v2933_v24 }
 0x31e   :  { %2444 = vmatpush3.bf16.msra.mxu1 %v2937_v25  ;;  %2421 = vmatprep.subr.bf16.mxu0 %v2792_v0 }
 0x31f   :  { %2445 = vmatprep.subr.bf16.mxu1 %v2792_v0 }
 0x321   :  { %2423 = vmatpush3.bf16.msra.mxu0 %v2941_v30 }
 0x322   :  { %2447 = vmatpush3.bf16.msra.mxu1 %v2945_v31  ;;  %2424 = vmatprep.subr.bf16.mxu0 %v2792_v0 }
 0x323   :  { %2448 = vmatprep.subr.bf16.mxu1 %v2792_v0 }
 0x325   :  { %2426 = vmatpush3.bf16.msra.mxu0 %v2949_v36 }
 0x326   :  { %2450 = vmatpush3.bf16.msra.mxu1 %v2953_v37  ;;  %2427 = vmatprep.subr.bf16.mxu0 %v2792_v0 }
 0x327   :  { %2451 = vmatprep.subr.bf16.mxu1 %v2792_v0 }
 0x329   :  { %2429 = vmatpush3.bf16.msra.mxu0 %v2957_v42 }
 0x32a   :  { %2453 = vmatpush3.bf16.msra.mxu1 %v2961_v43  ;;  %2430 = vmatprep.subr.bf16.mxu0 %v2792_v0 }
 0x32b   :  { %2454 = vmatprep.subr.bf16.mxu1 %v2792_v0 }
 0x32d   :  { %2432 = vmatpush3.bf16.msra.mxu0 %v2965_v48 }
 0x32e   :  { %2456 = vmatpush3.bf16.msra.mxu1 %v2969_v49  ;;  %2457 = vmatprep.subr.bf16.mxu0 %v2792_v0 }
 0x32f   :  { %2481 = vmatprep.subr.bf16.mxu1 %v2792_v0 }
 0x3e3   :  { %v650_v29 = vpop.f32.mrb[6].mxu0 }
 0x3e4   :  { %v654_v32 = vadd.f32 %v650_v29, %v583_v27  ;;  %v724_v33 = vpop.f32.mrb[6].mxu1  ;;  %v1901_v34 = vpop.f32.mrb[7].mxu0 }
 0x3e5   :  { %v728_v35 = vadd.f32 %v724_v33, %v657_v28  ;;  %v1936_v38 = vpop.f32.mrb[7].mxu1 }
 0x3e6   :  { %2624 = vtanh.f32 %v654_v32 }
 0x3e7   :  { %2626 = vtanh.f32 %v728_v35 }
 0x3f0   :  { %v2625_v39 = vpop.eup %2624 }
 0x3f1   :  { %v2627_v40 = vpop.eup %2626  ;;  %731 = vst [vmem:[#allocation12 + $0x18] sm:$0xff] %v2625_v39  ;;  %1970 = vmatmul.mubr.f32.vlgmr.msra.gmra.mrb[8].mxu0 %v2625_v39 }
 0x3f2   :  { %733 = vst [vmem:[#allocation13 + $0x20] sm:$0xff] %v2627_v40  ;;  %2005 = vmatmul.mubr.f32.vlgmr.msra.gmra.mrb[8].mxu1 %v2627_v40  ;;  %2459 = vmatpush3.bf16.msra.mxu0 %v2912_v5 }
 0x3f3   :  { %2483 = vmatpush3.bf16.msra.mxu1 %v2914_v9  ;;  %2460 = vmatprep.subr.bf16.mxu0 %v2792_v0 }
 0x3f4   :  { %2484 = vmatprep.subr.bf16.mxu1 %v2792_v0  ;;  %2039 = vmatprep.mubr.msk.f32.mxu0 %vm2793_vm0, %v2794_v1 }
 0x3f5   :  { %2074 = vmatprep.mubr.msk.f32.mxu1 %vm2793_vm0, %v2794_v1 }
 0x3f6   :  { %2462 = vmatpush3.bf16.msra.mxu0 %v2917_v12 }
 0x3f7   :  { %2486 = vmatpush3.bf16.msra.mxu1 %v2921_v13  ;;  %2463 = vmatprep.subr.bf16.mxu0 %v2792_v0 }
 0x3f8   :  { %2487 = vmatprep.subr.bf16.mxu1 %v2792_v0 }
 0x3fa   :  { %2465 = vmatpush3.bf16.msra.mxu0 %v2925_v18 }
 0x3fb   :  { %2489 = vmatpush3.bf16.msra.mxu1 %v2929_v19  ;;  %2466 = vmatprep.subr.bf16.mxu0 %v2792_v0 }
 0x3fc   :  { %2490 = vmatprep.subr.bf16.mxu1 %v2792_v0 }
 0x3fe   :  { %2468 = vmatpush3.bf16.msra.mxu0 %v2933_v24 }
 0x3ff   :  { %2492 = vmatpush3.bf16.msra.mxu1 %v2937_v25  ;;  %2469 = vmatprep.subr.bf16.mxu0 %v2792_v0 }
 0x400   :  { %2493 = vmatprep.subr.bf16.mxu1 %v2792_v0 }
 0x402   :  { %2471 = vmatpush3.bf16.msra.mxu0 %v2941_v30 }
 0x403   :  { %2495 = vmatpush3.bf16.msra.mxu1 %v2945_v31  ;;  %2472 = vmatprep.subr.bf16.mxu0 %v2792_v0 }
 0x404   :  { %2496 = vmatprep.subr.bf16.mxu1 %v2792_v0 }
 0x406   :  { %2474 = vmatpush3.bf16.msra.mxu0 %v2949_v36 }
 0x407   :  { %2498 = vmatpush3.bf16.msra.mxu1 %v2953_v37  ;;  %2475 = vmatprep.subr.bf16.mxu0 %v2792_v0 }
 0x408   :  { %2499 = vmatprep.subr.bf16.mxu1 %v2792_v0 }
 0x40a   :  { %2477 = vmatpush3.bf16.msra.mxu0 %v2957_v42 }
 0x40b   :  { %2501 = vmatpush3.bf16.msra.mxu1 %v2961_v43  ;;  %2478 = vmatprep.subr.bf16.mxu0 %v2792_v0 }
 0x40c   :  { %2502 = vmatprep.subr.bf16.mxu1 %v2792_v0 }
 0x40e   :  { %2480 = vmatpush3.bf16.msra.mxu0 %v2965_v48 }
 0x40f   :  { %2504 = vmatpush3.bf16.msra.mxu1 %v2969_v49  ;;  %2505 = vmatprep.subr.bf16.mxu0 %v2792_v0 }
 0x410   :  { %2529 = vmatprep.subr.bf16.mxu1 %v2792_v0 }
 0x4c4   :  { %v802_v45 = vpop.f32.mrb[8].mxu0 }
 0x4c5   :  { %v806_v46 = vadd.f32 %v802_v45, %v735_v41  ;;  %v876_v47 = vpop.f32.mrb[8].mxu1  ;;  %v1971_v50 = vpop.f32.mrb[9].mxu0 }
 0x4c6   :  { %v880_v51 = vadd.f32 %v876_v47, %v809_v44  ;;  %v2006_v52 = vpop.f32.mrb[9].mxu1 }
 0x4c7   :  { %2628 = vtanh.f32 %v806_v46 }
 0x4c8   :  { %2630 = vtanh.f32 %v880_v51 }
 0x4d1   :  { %v2629_v53 = vpop.eup %2628 }
 0x4d2   :  { %v2631_v54 = vpop.eup %2630  ;;  %883 = vst [vmem:[#allocation12 + $0x20] sm:$0xff] %v2629_v53  ;;  %2040 = vmatmul.mubr.f32.vlgmr.msra.gmra.mrb[10].mxu0 %v2629_v53 }
 0x4d3   :  { %885 = vst [vmem:[#allocation13 + $0x18] sm:$0xff] %v2631_v54  ;;  %2075 = vmatmul.mubr.f32.vlgmr.msra.gmra.mrb[10].mxu1 %v2631_v54  ;;  %2507 = vmatpush3.bf16.msra.mxu0 %v2912_v5 }
 0x4d4   :  { %2531 = vmatpush3.bf16.msra.mxu1 %v2914_v9  ;;  %2508 = vmatprep.subr.bf16.mxu0 %v2792_v0 }
 0x4d5   :  { %2532 = vmatprep.subr.bf16.mxu1 %v2792_v0  ;;  %2109 = vmatprep.mubr.msk.f32.mxu0 %vm2793_vm0, %v2794_v1 }
 0x4d6   :  { %2144 = vmatprep.mubr.msk.f32.mxu1 %vm2793_vm0, %v2794_v1 }
 0x4d7   :  { %2510 = vmatpush3.bf16.msra.mxu0 %v2917_v12 }
 0x4d8   :  { %2534 = vmatpush3.bf16.msra.mxu1 %v2921_v13  ;;  %2511 = vmatprep.subr.bf16.mxu0 %v2792_v0 }
 0x4d9   :  { %2535 = vmatprep.subr.bf16.mxu1 %v2792_v0 }
 0x4db   :  { %2513 = vmatpush3.bf16.msra.mxu0 %v2925_v18 }
 0x4dc   :  { %2537 = vmatpush3.bf16.msra.mxu1 %v2929_v19  ;;  %2514 = vmatprep.subr.bf16.mxu0 %v2792_v0 }
 0x4dd   :  { %2538 = vmatprep.subr.bf16.mxu1 %v2792_v0 }
 0x4df   :  { %2516 = vmatpush3.bf16.msra.mxu0 %v2933_v24 }
 0x4e0   :  { %2540 = vmatpush3.bf16.msra.mxu1 %v2937_v25  ;;  %2517 = vmatprep.subr.bf16.mxu0 %v2792_v0 }
 0x4e1   :  { %2541 = vmatprep.subr.bf16.mxu1 %v2792_v0 }
 0x4e3   :  { %2519 = vmatpush3.bf16.msra.mxu0 %v2941_v30 }
 0x4e4   :  { %2543 = vmatpush3.bf16.msra.mxu1 %v2945_v31  ;;  %2520 = vmatprep.subr.bf16.mxu0 %v2792_v0 }
 0x4e5   :  { %2544 = vmatprep.subr.bf16.mxu1 %v2792_v0 }
 0x4e7   :  { %2522 = vmatpush3.bf16.msra.mxu0 %v2949_v36 }
 0x4e8   :  { %2546 = vmatpush3.bf16.msra.mxu1 %v2953_v37  ;;  %2523 = vmatprep.subr.bf16.mxu0 %v2792_v0 }
 0x4e9   :  { %2547 = vmatprep.subr.bf16.mxu1 %v2792_v0 }
 0x4eb   :  { %2525 = vmatpush3.bf16.msra.mxu0 %v2957_v42 }
 0x4ec   :  { %2549 = vmatpush3.bf16.msra.mxu1 %v2961_v43  ;;  %2526 = vmatprep.subr.bf16.mxu0 %v2792_v0 }
 0x4ed   :  { %2550 = vmatprep.subr.bf16.mxu1 %v2792_v0 }
 0x4ef   :  { %2528 = vmatpush3.bf16.msra.mxu0 %v2965_v48 }
 0x4f0   :  { %2552 = vmatpush3.bf16.msra.mxu1 %v2969_v49  ;;  %2553 = vmatprep.subr.bf16.mxu0 %v2792_v0 }
 0x4f1   :  { %2577 = vmatprep.subr.bf16.mxu1 %v2792_v0 }
 0x5a5   :  { %v954_v57 = vpop.f32.mrb[10].mxu0 }
 0x5a6   :  { %v958_v58 = vadd.f32 %v954_v57, %v887_v55  ;;  %v1028_v59 = vpop.f32.mrb[10].mxu1  ;;  %v2041_v60 = vpop.f32.mrb[11].mxu0 }
 0x5a7   :  { %v1032_v61 = vadd.f32 %v1028_v59, %v961_v56  ;;  %v2076_v62 = vpop.f32.mrb[11].mxu1 }
 0x5a8   :  { %2632 = vtanh.f32 %v958_v58 }
 0x5a9   :  { %2634 = vtanh.f32 %v1032_v61 }
 0x5b2   :  { %v2633_v63 = vpop.eup %2632 }
 0x5b3   :  { %v2635_v2 = vpop.eup %2634  ;;  %1035 = vst [vmem:[#allocation12 + $0x28] sm:$0xff] %v2633_v63  ;;  %2110 = vmatmul.mubr.f32.vlgmr.msra.gmra.mrb[12].mxu0 %v2633_v63 }
 0x5b4   :  { %1037 = vst [vmem:[#allocation13 + $0x10] sm:$0xff] %v2635_v2  ;;  %2145 = vmatmul.mubr.f32.vlgmr.msra.gmra.mrb[12].mxu1 %v2635_v2  ;;  %2555 = vmatpush3.bf16.msra.mxu0 %v2912_v5  ;;  %v1113_v5 = vld [vmem:[#allocation7 + $0x8] sm:$0xff] }
 0x5b5   :  { %2579 = vmatpush3.bf16.msra.mxu1 %v2914_v9  ;;  %2556 = vmatprep.subr.bf16.mxu0 %v2792_v0 }
 0x5b6   :  { %2580 = vmatprep.subr.bf16.mxu1 %v2792_v0  ;;  %2179 = vmatprep.mubr.msk.f32.mxu0 %vm2793_vm0, %v2794_v1 }
 0x5b7   :  { %2214 = vmatprep.mubr.msk.f32.mxu1 %vm2793_vm0, %v2794_v1  ;;  %v1039_v1 = vld [vmem:[#allocation4 + $0x30] sm:$0xff] }
 0x5b8   :  { %2558 = vmatpush3.bf16.msra.mxu0 %v2917_v12 }
 0x5b9   :  { %2582 = vmatpush3.bf16.msra.mxu1 %v2921_v13  ;;  %2559 = vmatprep.subr.bf16.mxu0 %v2792_v0 }
 0x5ba   :  { %2583 = vmatprep.subr.bf16.mxu1 %v2792_v0 }
 0x5bc   :  { %2561 = vmatpush3.bf16.msra.mxu0 %v2925_v18 }
 0x5bd   :  { %2585 = vmatpush3.bf16.msra.mxu1 %v2929_v19  ;;  %2562 = vmatprep.subr.bf16.mxu0 %v2792_v0 }
 0x5be   :  { %2586 = vmatprep.subr.bf16.mxu1 %v2792_v0 }
 0x5c0   :  { %2564 = vmatpush3.bf16.msra.mxu0 %v2933_v24 }
 0x5c1   :  { %2588 = vmatpush3.bf16.msra.mxu1 %v2937_v25  ;;  %2565 = vmatprep.subr.bf16.mxu0 %v2792_v0 }
 0x5c2   :  { %2589 = vmatprep.subr.bf16.mxu1 %v2792_v0 }
 0x5c4   :  { %2567 = vmatpush3.bf16.msra.mxu0 %v2941_v30 }
 0x5c5   :  { %2591 = vmatpush3.bf16.msra.mxu1 %v2945_v31  ;;  %2568 = vmatprep.subr.bf16.mxu0 %v2792_v0  ;;  %v1264_v31 = vld [vmem:[#allocation7] sm:$0xff] }
 0x5c6   :  { %2592 = vmatprep.subr.bf16.mxu1 %v2792_v0 }
 0x5c8   :  { %2570 = vmatpush3.bf16.msra.mxu0 %v2949_v36 }
 0x5c9   :  { %2594 = vmatpush3.bf16.msra.mxu1 %v2953_v37  ;;  %2571 = vmatprep.subr.bf16.mxu0 %v2792_v0 }
 0x5ca   :  { %2595 = vmatprep.subr.bf16.mxu1 %v2792_v0 }
 0x5cc   :  { %2573 = vmatpush3.bf16.msra.mxu0 %v2957_v42 }
 0x5cd   :  { %2597 = vmatpush3.bf16.msra.mxu1 %v2961_v43  ;;  %2574 = vmatprep.subr.bf16.mxu0 %v2792_v0 }
 0x5ce   :  { %2598 = vmatprep.subr.bf16.mxu1 %v2792_v0  ;;  %v1191_v0 = vld [vmem:[#allocation4 + $0x38] sm:$0xff] }
 0x5d0   :  { %2576 = vmatpush3.bf16.msra.mxu0 %v2965_v48 }
 0x5d1   :  { %2600 = vmatpush3.bf16.msra.mxu1 %v2969_v49 }
 0x686   :  { %v1106_v9 = vpop.f32.mrb[12].mxu0 }
 0x687   :  { %v1110_v12 = vadd.f32 %v1106_v9, %v1039_v1  ;;  %v1180_v13 = vpop.f32.mrb[12].mxu1  ;;  %v2111_v18 = vpop.f32.mrb[13].mxu0 }
 0x688   :  { %v1184_v19 = vadd.f32 %v1180_v13, %v1113_v5  ;;  %v2146_v24 = vpop.f32.mrb[13].mxu1 }
 0x689   :  { %2636 = vtanh.f32 %v1110_v12 }
 0x68a   :  { %2638 = vtanh.f32 %v1184_v19 }
 0x693   :  { %v2637_v25 = vpop.eup %2636 }
 0x694   :  { %v2639_v30 = vpop.eup %2638  ;;  %1187 = vst [vmem:[#allocation12 + $0x30] sm:$0xff] %v2637_v25  ;;  %2180 = vmatmul.mubr.f32.vlgmr.msra.gmra.mrb[14].mxu0 %v2637_v25 }
 0x695   :  { %1189 = vst [vmem:[#allocation13 + $0x8] sm:$0xff] %v2639_v30  ;;  %2215 = vmatmul.mubr.f32.vlgmr.msra.gmra.mrb[14].mxu1 %v2639_v30 }
 0x767   :  { %v1258_v36 = vpop.f32.mrb[14].mxu0 }
 0x768   :  { %v1262_v37 = vadd.f32 %v1258_v36, %v1191_v0  ;;  %v1331_v42 = vpop.f32.mrb[14].mxu1  ;;  %v2181_v43 = vpop.f32.mrb[15].mxu0 }
 0x769   :  { %v1335_v48 = vadd.f32 %v1331_v42, %v1264_v31  ;;  %v2216_v49 = vpop.f32.mrb[15].mxu1 }
 0x76a   :  { %2640 = vtanh.f32 %v1262_v37 }
 0x76b   :  { %2642 = vtanh.f32 %v1335_v48 }
 0x774   :  { %v2641_v3 = vpop.eup %2640 }
 0x775   :  { %v2643_v4 = vpop.eup %2642  ;;  %1338 = vst [vmem:[#allocation12 + $0x38] sm:$0xff] %v2641_v3 }
 0x776   :  { %1339 = vst [vmem:[#allocation13] sm:$0xff] %v2643_v4 }
 0x777   :  { %2743 = shalt.err (!%p2740_p8)
}
 0x778   :  { %s2744_s29 = scalar_lea.hbm %s3271_s5, 1024 }
 0x779   :  { %p2745_p9 = scmp.ne.s32.totalorder %s3271_s5, %s2744_s29  ;;  %p2748_p10 = scmp.lt.u32.totalorder %s2744_s29, %s3271_s5 }
 0x77b   :  { %p2750_p11 = pnand %p2748_p10, %p2745_p9 }
 0x77d   :  { %2753 = shalt.err (!%p2750_p11)
}
 0x77e   :  { %1353 = dma.vmem_to_hbm [thread:$0]  %s1348_s22, 1024, %s3271_s5, [#allocation6], %s2788_s9, %s2788_s9, %s2789_s10  }
 0x77f   :  { %s2754_s12 = scalar_lea.vmem %s3229_s25, 1024  ;;  %p2759_p13 = scmp.lt.s32.totalorder %s3229_s25, %s3229_s25 }
 0x780   :  { %p2755_p12 = scmp.ne.s32.totalorder %s3229_s25, %s2754_s12  ;;  %p2760_p0 = scmp.lt.s32.totalorder %s2754_s12, %s2754_s12 }
 0x782   :  { %p2761_p1 = por %p2760_p0, %p2759_p13 }
 0x784   :  { %p2762_p2 = pnand %p2761_p1, %p2755_p12 }
 0x786   :  { %2765 = shalt.err (!%p2762_p2)
}
 0x787   :  { %s2766_s15 = scalar_lea.hbm %s3272_s6, 1024 }
 0x788   :  { %p2767_p3 = scmp.ne.s32.totalorder %s3272_s6, %s2766_s15  ;;  %p2770_p4 = scmp.lt.u32.totalorder %s2766_s15, %s3272_s6 }
 0x78a   :  { %p2772_p5 = pnand %p2770_p4, %p2767_p3 }
 0x78c   :  { %2775 = shalt.err (!%p2772_p5)
}
 0x78d   :  { %1369 = dma.vmem_to_hbm [thread:$0]  %s3229_s25, 1024, %s3272_s6, [#allocation14], %s2788_s9, %s2788_s9, %s2789_s10  }
 0x78e   :  { %2782 = dma.done.wait [#allocation6], 1024  }
 0x78f   :  { %2783 = vsyncadd [#allocation6], 4294966272 }
 0x790   :  { %2784 = dma.done.wait [#allocation14], 1024  }
 0x791   :  { %2785 = vsyncadd [#allocation14], 4294966272 }
 0x792   :  { %1376 = vsyncpa [#allocation5], 1 }
 0x793   :  { %1377 = vsyncpa [#allocation8], 1 }
 0x794   :  { %1378 = vsyncpa [#allocation11], 1 }
 0x795   :  { %1379 = vsyncpa [#allocation6], 1 }
 0x796   :  { %1380 = vsyncpa [#allocation14], 1 }

</bundles_post_ra>
